<compile_context>
chip_gen: v5e
topology: v5e:2x2
jax: 0.10.0
libtpu: 0.0.40
codegen_flags: <defaults>
</compile_context>

<pallas_src>
import functools

import jax
import jax.numpy as jnp
from jax.experimental import pallas as pl
from jax.experimental.pallas import tpu as pltpu

EPS = 1e-5          # InstanceNorm2d default eps
NEG_SLOPE = 0.01    # LeakyReLU default negative_slope


# ----------------------------- host-side helpers -----------------------------
def _vmem_limit_bytes():
    # v5e/v6e: 128 MiB physical VMEM -> raise scoped limit to ~96 MiB.
    # v7x:      64 MiB physical VMEM -> cap around 48 MiB.
    try:
        cap = int(getattr(pltpu.get_tpu_info(), "vmem_capacity_bytes",
                          128 * 1024 * 1024))
    except Exception:
        cap = 128 * 1024 * 1024
    return min(cap * 3 // 4, 100 * 1024 * 1024)


def _make_tap_masks(H, W):
    """0/1 halo masks (9, 1, P) f32 + static lane-roll shifts, tap order t=kh*3+kw."""
    P = H * W
    p = jnp.arange(P, dtype=jnp.int32)
    h = p // W
    w = p - h * W
    masks, shifts = [], []
    for kh in range(3):
        for kw in range(3):
            dy, dx = kh - 1, kw - 1
            valid = ((h + dy >= 0) & (h + dy < H) &
                     (w + dx >= 0) & (w + dx < W))
            masks.append(valid.astype(jnp.float32))
            shifts.append(int((-(dy * W + dx)) % P))  # rolled[p] = inp[p + dy*W + dx]
    return jnp.stack(masks)[:, None, :], tuple(shifts)


def _samples_per_step(N, Cin, Cout, P):
    # Fuse several tiny samples per grid step (per-step overhead ~0.35us);
    # fall back to one sample per step once activations get big.
    per_sample = (Cin + Cout) * P * 4
    for nb in range(min(N, 8), 0, -1):
        if N % nb == 0 and nb * per_sample <= (1 << 20):
            return nb
    return 1


# ------------------------------- fused kernel --------------------------------
def _leaky(y):
    return jnp.where(y > 0, y, NEG_SLOPE * y)


def _fused_res_block_kernel(mask_ref, x_ref,
                            w1_ref, b1_ref, g1_ref, bb1_ref,
                            w2_ref, b2_ref, g2_ref, bb2_ref,
                            w3_ref, b3_ref, o_ref, *, shifts, nb):
    def conv3x3(inp, w_ref, b_ref):
        # inp: (C, P) f32.  Build the 9 shifted+masked taps (XLU lane rolls,
        # precomputed halo masks), concatenate in-vregs into one (9*C, P) slab,
        # cast to bf16 and feed a SINGLE stacked-K MXU matmul (f32 accumulate).
        taps = []
        for t, shift in enumerate(shifts):
            if shift == 0:
                tap = inp                               # center tap, always valid
            else:
                tap = pltpu.roll(inp, shift, 1) * mask_ref[t]
            taps.append(tap)
        slab = jnp.concatenate(taps, axis=0).astype(jnp.bfloat16)   # (9*C, P)
        return jnp.dot(w_ref[...], slab,
                       preferred_element_type=jnp.float32) + b_ref[...]

    def inorm(y, gamma, beta):
        # InstanceNorm2d (biased var, eps inside rsqrt) with the affine folded
        # into one per-channel scale/shift: y*s + (beta - mean*s).
        mean = jnp.mean(y, axis=1, keepdims=True)
        var = jnp.mean(y * y, axis=1, keepdims=True) - mean * mean
        s = gamma * jax.lax.rsqrt(var + EPS)
        return y * s + (beta - mean * s)

    for smp in range(nb):                               # samples in this step
        x = x_ref[smp]                                  # (Cin, P) f32, lane-dense
        # stage 1: act1(norm1(conv1(x))) — never leaves VMEM/vregs
        y1 = _leaky(inorm(conv3x3(x, w1_ref, b1_ref),
                          g1_ref[...], bb1_ref[...]))
        # stage 2: norm2(conv2(y1)) + 1x1 shortcut, then act2
        y2 = inorm(conv3x3(y1, w2_ref, b2_ref),
                   g2_ref[...], bb2_ref[...])
        res = jnp.dot(w3_ref[...], x.astype(jnp.bfloat16),
                      preferred_element_type=jnp.float32) + b3_ref[...]
        o_ref[smp] = _leaky(y2 + res).astype(o_ref.dtype)


# ------------------------------ pallas_call glue ------------------------------
@jax.jit
def basic_res_block_forward(x, params):
    # x: (N, Cin, H, W) NCHW -> (N, Cout, H, W) NCHW
    N, Cin, H, W = x.shape
    Cout = params["w1"].shape[0]
    P = H * W
    nb = _samples_per_step(N, Cin, Cout, P)

    masks, shifts = _make_tap_masks(H, W)
    x_flat = x.reshape(N, Cin, P)                       # pure reshape, no transpose

    # (Cout, Cin, 3, 3) -> (Cout, 9*Cin): column index = t*Cin + c with t=kh*3+kw,
    # matching the in-kernel tap-slab row order.  bf16 MXU operands.
    w1t = jnp.transpose(params["w1"], (0, 2, 3, 1)).reshape(Cout, 9 * Cin)
    w1t = w1t.astype(jnp.bfloat16)
    w2t = jnp.transpose(params["w2"], (0, 2, 3, 1)).reshape(Cout, 9 * Cout)
    w2t = w2t.astype(jnp.bfloat16)
    w3 = params["w3"][:, :, 0, 0].astype(jnp.bfloat16)  # (Cout, Cin)
    col = lambda v: v[:, None].astype(jnp.float32)      # (C,) -> (C, 1)

    kernel = functools.partial(_fused_res_block_kernel, shifts=shifts, nb=nb)
    rep2 = lambda n: (0, 0)
    rep3 = lambda n: (0, 0, 0)

    out = pl.pallas_call(
        kernel,
        out_shape=jax.ShapeDtypeStruct((N, Cout, P), jnp.float32),
        grid=(N // nb,),
        in_specs=[
            pl.BlockSpec((9, 1, P), rep3),                    # halo masks (host-precomputed)
            pl.BlockSpec((nb, Cin, P), lambda n: (n, 0, 0)),  # x, channel-major
            pl.BlockSpec((Cout, 9 * Cin), rep2),              # conv1 weights, stacked K
            pl.BlockSpec((Cout, 1), rep2),                    # b1
            pl.BlockSpec((Cout, 1), rep2),                    # gamma1
            pl.BlockSpec((Cout, 1), rep2),                    # beta1
            pl.BlockSpec((Cout, 9 * Cout), rep2),             # conv2 weights, stacked K
            pl.BlockSpec((Cout, 1), rep2),                    # b2
            pl.BlockSpec((Cout, 1), rep2),                    # gamma2
            pl.BlockSpec((Cout, 1), rep2),                    # beta2
            pl.BlockSpec((Cout, Cin), rep2),                  # 1x1 shortcut weight
            pl.BlockSpec((Cout, 1), rep2),                    # b3
        ],
        out_specs=pl.BlockSpec((nb, Cout, P), lambda n: (n, 0, 0)),
        compiler_params=pltpu.CompilerParams(
            dimension_semantics=("parallel",),
            vmem_limit_bytes=_vmem_limit_bytes(),
        ),
    )(masks, x_flat,
      w1t, col(params["b1"]), col(params["g1"]), col(params["beta1"]),
      w2t, col(params["b2"]), col(params["g2"]), col(params["beta2"]),
      w3, col(params["b3"]))
    return out.reshape(N, Cout, H, W)


# ------------------------------ pure-JAX reference ----------------------------
def _reference(x, params):
    def conv(x, w, b, pad):
        y = jax.lax.conv_general_dilated(
            x, w, (1, 1), [(pad, pad), (pad, pad)],
            dimension_numbers=("NCHW", "OIHW", "NCHW"),
            precision=jax.lax.Precision.HIGHEST)
        return y + b[None, :, None, None]

    def inorm(x, g, b):
        m = x.mean(axis=(2, 3), keepdims=True)
        v = ((x - m) ** 2).mean(axis=(2, 3), keepdims=True)
        return (x - m) / jnp.sqrt(v + EPS) * g[None, :, None, None] + b[None, :, None, None]

    def lrelu(x):
        return jnp.where(x > 0, x, NEG_SLOPE * x)

    y = lrelu(inorm(conv(x, params["w1"], params["b1"], 1), params["g1"], params["beta1"]))
    y = inorm(conv(y, params["w2"], params["b2"], 1), params["g2"], params["beta2"])
    xr = conv(x, params["w3"], params["b3"], 0)
    return lrelu(y + xr)


# ------------------------------------ main ------------------------------------
if __name__ == "__main__":
    N, Cin, Cout, H, W = 2, 4, 8, 16, 16

    key = jax.random.PRNGKey(0)
    ks = jax.random.split(key, 12)
    params = {
        "w1": jax.random.normal(ks[0], (Cout, Cin, 3, 3), jnp.float32) * 0.2,
        "b1": jax.random.normal(ks[1], (Cout,), jnp.float32) * 0.1,
        "g1": 1.0 + 0.1 * jax.random.normal(ks[2], (Cout,), jnp.float32),
        "beta1": 0.1 * jax.random.normal(ks[3], (Cout,), jnp.float32),
        "w2": jax.random.normal(ks[4], (Cout, Cout, 3, 3), jnp.float32) * 0.15,
        "b2": jax.random.normal(ks[5], (Cout,), jnp.float32) * 0.1,
        "g2": 1.0 + 0.1 * jax.random.normal(ks[6], (Cout,), jnp.float32),
        "beta2": 0.1 * jax.random.normal(ks[7], (Cout,), jnp.float32),
        "w3": jax.random.normal(ks[8], (Cout, Cin, 1, 1), jnp.float32) * 0.3,
        "b3": jax.random.normal(ks[9], (Cout,), jnp.float32) * 0.1,
    }
    x = jax.random.normal(ks[10], (N, Cin, H, W), jnp.float32)

    out = basic_res_block_forward(x, params)
    out = jax.block_until_ready(out)

    ref = _reference(x, params)
    assert out.shape == (N, Cout, H, W), out.shape
    # bf16 MXU operands (f32 accumulate) cost ~2-3 decimal digits vs the f32
    # reference; real structural bugs (wrong tap/mask/norm) produce O(1) errors.
    max_err = float(jnp.max(jnp.abs(out - ref)))
    assert max_err < 1e-1, f"mismatch vs reference: {max_err}"

    print("KERNEL_OK")
</pallas_src>

<mosaic_0001>
module attributes {stable_mosaic.version = 11 : i64} {
  func.func @_fused_res_block_kernel(%arg0: i32, %arg1: memref<9x1x256xf32, #tpu.memory_space<vmem>>, %arg2: memref<2x4x256xf32, #tpu.memory_space<vmem>>, %arg3: memref<8x36xbf16, #tpu.memory_space<vmem>>, %arg4: memref<8x1xf32, #tpu.memory_space<vmem>>, %arg5: memref<8x1xf32, #tpu.memory_space<vmem>>, %arg6: memref<8x1xf32, #tpu.memory_space<vmem>>, %arg7: memref<8x72xbf16, #tpu.memory_space<vmem>>, %arg8: memref<8x1xf32, #tpu.memory_space<vmem>>, %arg9: memref<8x1xf32, #tpu.memory_space<vmem>>, %arg10: memref<8x1xf32, #tpu.memory_space<vmem>>, %arg11: memref<8x4xbf16, #tpu.memory_space<vmem>>, %arg12: memref<8x1xf32, #tpu.memory_space<vmem>>, %arg13: memref<2x8x256xf32, #tpu.memory_space<vmem>>) attributes {dimension_semantics = [#tpu.dimension_semantics<parallel>], iteration_bounds = array<i64: 1>, scalar_prefetch = 0 : i64, scratch_operands = 0 : i64, tpu.core_type = #tpu.core_type<tc>, window_params = [{pipeline_mode = #tpu.pipeline_mode<synchronous>, transform_indices = @transform_0, window_bounds = array<i64: 9, 1, 256>}, {transform_indices = @transform_1, window_bounds = array<i64: 2, 4, 256>}, {pipeline_mode = #tpu.pipeline_mode<synchronous>, transform_indices = @transform_2, window_bounds = array<i64: 8, 36>}, {pipeline_mode = #tpu.pipeline_mode<synchronous>, transform_indices = @transform_3, window_bounds = array<i64: 8, 1>}, {pipeline_mode = #tpu.pipeline_mode<synchronous>, transform_indices = @transform_4, window_bounds = array<i64: 8, 1>}, {pipeline_mode = #tpu.pipeline_mode<synchronous>, transform_indices = @transform_5, window_bounds = array<i64: 8, 1>}, {pipeline_mode = #tpu.pipeline_mode<synchronous>, transform_indices = @transform_6, window_bounds = array<i64: 8, 72>}, {pipeline_mode = #tpu.pipeline_mode<synchronous>, transform_indices = @transform_7, window_bounds = array<i64: 8, 1>}, {pipeline_mode = #tpu.pipeline_mode<synchronous>, transform_indices = @transform_8, window_bounds = array<i64: 8, 1>}, {pipeline_mode = #tpu.pipeline_mode<synchronous>, transform_indices = @transform_9, window_bounds = array<i64: 8, 1>}, {pipeline_mode = #tpu.pipeline_mode<synchronous>, transform_indices = @transform_10, window_bounds = array<i64: 8, 4>}, {pipeline_mode = #tpu.pipeline_mode<synchronous>, transform_indices = @transform_11, window_bounds = array<i64: 8, 1>}, {transform_indices = @transform_12, window_bounds = array<i64: 2, 8, 256>}]} {
    %c0 = arith.constant 0 : index
    %c0_0 = arith.constant 0 : index
    %c0_1 = arith.constant 0 : index
    %0 = vector.load %arg2[%c0, %c0_0, %c0_1] : memref<2x4x256xf32, #tpu.memory_space<vmem>>, vector<1x4x256xf32>
    %1 = vector.shape_cast %0 : vector<1x4x256xf32> to vector<4x256xf32>
    %c17_i32 = arith.constant 17 : i32
    %2 = tpu.dynamic_rotate %1 by %c17_i32 dim 1 : vector<4x256xf32>, i32 -> vector<4x256xf32>
    %c0_2 = arith.constant 0 : index
    %c0_3 = arith.constant 0 : index
    %c0_4 = arith.constant 0 : index
    %3 = vector.load %arg1[%c0_2, %c0_3, %c0_4] : memref<9x1x256xf32, #tpu.memory_space<vmem>>, vector<1x1x256xf32>
    %4 = vector.shape_cast %3 : vector<1x1x256xf32> to vector<1x256xf32>
    %5 = vector.broadcast %4 : vector<1x256xf32> to vector<4x256xf32>
    %6 = arith.mulf %2, %5 : vector<4x256xf32>
    %c16_i32 = arith.constant 16 : i32
    %7 = tpu.dynamic_rotate %1 by %c16_i32 dim 1 : vector<4x256xf32>, i32 -> vector<4x256xf32>
    %c1 = arith.constant 1 : index
    %c0_5 = arith.constant 0 : index
    %c0_6 = arith.constant 0 : index
    %8 = vector.load %arg1[%c1, %c0_5, %c0_6] : memref<9x1x256xf32, #tpu.memory_space<vmem>>, vector<1x1x256xf32>
    %9 = vector.shape_cast %8 : vector<1x1x256xf32> to vector<1x256xf32>
    %10 = vector.broadcast %9 : vector<1x256xf32> to vector<4x256xf32>
    %11 = arith.mulf %7, %10 : vector<4x256xf32>
    %c15_i32 = arith.constant 15 : i32
    %12 = tpu.dynamic_rotate %1 by %c15_i32 dim 1 : vector<4x256xf32>, i32 -> vector<4x256xf32>
    %c2 = arith.constant 2 : index
    %c0_7 = arith.constant 0 : index
    %c0_8 = arith.constant 0 : index
    %13 = vector.load %arg1[%c2, %c0_7, %c0_8] : memref<9x1x256xf32, #tpu.memory_space<vmem>>, vector<1x1x256xf32>
    %14 = vector.shape_cast %13 : vector<1x1x256xf32> to vector<1x256xf32>
    %15 = vector.broadcast %14 : vector<1x256xf32> to vector<4x256xf32>
    %16 = arith.mulf %12, %15 : vector<4x256xf32>
    %c1_i32 = arith.constant 1 : i32
    %17 = tpu.dynamic_rotate %1 by %c1_i32 dim 1 : vector<4x256xf32>, i32 -> vector<4x256xf32>
    %c3 = arith.constant 3 : index
    %c0_9 = arith.constant 0 : index
    %c0_10 = arith.constant 0 : index
    %18 = vector.load %arg1[%c3, %c0_9, %c0_10] : memref<9x1x256xf32, #tpu.memory_space<vmem>>, vector<1x1x256xf32>
    %19 = vector.shape_cast %18 : vector<1x1x256xf32> to vector<1x256xf32>
    %20 = vector.broadcast %19 : vector<1x256xf32> to vector<4x256xf32>
    %21 = arith.mulf %17, %20 : vector<4x256xf32>
    %c255_i32 = arith.constant 255 : i32
    %22 = tpu.dynamic_rotate %1 by %c255_i32 dim 1 : vector<4x256xf32>, i32 -> vector<4x256xf32>
    %c5 = arith.constant 5 : index
    %c0_11 = arith.constant 0 : index
    %c0_12 = arith.constant 0 : index
    %23 = vector.load %arg1[%c5, %c0_11, %c0_12] : memref<9x1x256xf32, #tpu.memory_space<vmem>>, vector<1x1x256xf32>
    %24 = vector.shape_cast %23 : vector<1x1x256xf32> to vector<1x256xf32>
    %25 = vector.broadcast %24 : vector<1x256xf32> to vector<4x256xf32>
    %26 = arith.mulf %22, %25 : vector<4x256xf32>
    %c241_i32 = arith.constant 241 : i32
    %27 = tpu.dynamic_rotate %1 by %c241_i32 dim 1 : vector<4x256xf32>, i32 -> vector<4x256xf32>
    %c6 = arith.constant 6 : index
    %c0_13 = arith.constant 0 : index
    %c0_14 = arith.constant 0 : index
    %28 = vector.load %arg1[%c6, %c0_13, %c0_14] : memref<9x1x256xf32, #tpu.memory_space<vmem>>, vector<1x1x256xf32>
    %29 = vector.shape_cast %28 : vector<1x1x256xf32> to vector<1x256xf32>
    %30 = vector.broadcast %29 : vector<1x256xf32> to vector<4x256xf32>
    %31 = arith.mulf %27, %30 : vector<4x256xf32>
    %c240_i32 = arith.constant 240 : i32
    %32 = tpu.dynamic_rotate %1 by %c240_i32 dim 1 : vector<4x256xf32>, i32 -> vector<4x256xf32>
    %c7 = arith.constant 7 : index
    %c0_15 = arith.constant 0 : index
    %c0_16 = arith.constant 0 : index
    %33 = vector.load %arg1[%c7, %c0_15, %c0_16] : memref<9x1x256xf32, #tpu.memory_space<vmem>>, vector<1x1x256xf32>
    %34 = vector.shape_cast %33 : vector<1x1x256xf32> to vector<1x256xf32>
    %35 = vector.broadcast %34 : vector<1x256xf32> to vector<4x256xf32>
    %36 = arith.mulf %32, %35 : vector<4x256xf32>
    %c239_i32 = arith.constant 239 : i32
    %37 = tpu.dynamic_rotate %1 by %c239_i32 dim 1 : vector<4x256xf32>, i32 -> vector<4x256xf32>
    %c8 = arith.constant 8 : index
    %c0_17 = arith.constant 0 : index
    %c0_18 = arith.constant 0 : index
    %38 = vector.load %arg1[%c8, %c0_17, %c0_18] : memref<9x1x256xf32, #tpu.memory_space<vmem>>, vector<1x1x256xf32>
    %39 = vector.shape_cast %38 : vector<1x1x256xf32> to vector<1x256xf32>
    %40 = vector.broadcast %39 : vector<1x256xf32> to vector<4x256xf32>
    %41 = arith.mulf %37, %40 : vector<4x256xf32>
    %42 = tpu.concatenate %6, %11, %16, %21, %1, %26, %31, %36, %41 in 0 : vector<4x256xf32>, vector<4x256xf32>, vector<4x256xf32>, vector<4x256xf32>, vector<4x256xf32>, vector<4x256xf32>, vector<4x256xf32>, vector<4x256xf32>, vector<4x256xf32> -> vector<36x256xf32>
    %43 = arith.truncf %42 : vector<36x256xf32> to vector<36x256xbf16>
    %c0_19 = arith.constant 0 : index
    %c0_20 = arith.constant 0 : index
    %44 = vector.load %arg3[%c0_19, %c0_20] : memref<8x36xbf16, #tpu.memory_space<vmem>>, vector<8x36xbf16>
    %cst = arith.constant dense<0.000000e+00> : vector<8x256xf32>
    %45 = tpu.matmul %44, %43, %cst {dimension_numbers = #tpu.dot_dimension_numbers<[1], [0], [0], [1], [0, 0, 1, 1], [], []>} : vector<8x36xbf16>, vector<36x256xbf16>, vector<8x256xf32> -> vector<8x256xf32>
    %c0_21 = arith.constant 0 : index
    %c0_22 = arith.constant 0 : index
    %46 = vector.load %arg4[%c0_21, %c0_22] : memref<8x1xf32, #tpu.memory_space<vmem>>, vector<8x1xf32>
    %47 = vector.broadcast %46 : vector<8x1xf32> to vector<8x256xf32>
    %48 = arith.addf %45, %47 : vector<8x256xf32>
    %c0_23 = arith.constant 0 : index
    %c0_24 = arith.constant 0 : index
    %49 = vector.load %arg5[%c0_23, %c0_24] : memref<8x1xf32, #tpu.memory_space<vmem>>, vector<8x1xf32>
    %c0_25 = arith.constant 0 : index
    %c0_26 = arith.constant 0 : index
    %50 = vector.load %arg6[%c0_25, %c0_26] : memref<8x1xf32, #tpu.memory_space<vmem>>, vector<8x1xf32>
    %cst_27 = arith.constant dense<0.000000e+00> : vector<8xf32>
    %51 = vector.multi_reduction <add>, %48, %cst_27 [1] : vector<8x256xf32> to vector<8xf32>
    %52 = vector.shape_cast %51 : vector<8xf32> to vector<8x1xf32>
    %cst_28 = arith.constant 2.560000e+02 : f32
    %53 = vector.broadcast %cst_28 : f32 to vector<8x1xf32>
    %54 = arith.divf %52, %53 : vector<8x1xf32>
    %55 = arith.mulf %48, %48 : vector<8x256xf32>
    %cst_29 = arith.constant dense<0.000000e+00> : vector<8xf32>
    %56 = vector.multi_reduction <add>, %55, %cst_29 [1] : vector<8x256xf32> to vector<8xf32>
    %57 = vector.shape_cast %56 : vector<8xf32> to vector<8x1xf32>
    %cst_30 = arith.constant 2.560000e+02 : f32
    %58 = vector.broadcast %cst_30 : f32 to vector<8x1xf32>
    %59 = arith.divf %57, %58 : vector<8x1xf32>
    %60 = arith.mulf %54, %54 : vector<8x1xf32>
    %61 = arith.subf %59, %60 : vector<8x1xf32>
    %cst_31 = arith.constant 9.99999974E-6 : f32
    %62 = vector.broadcast %cst_31 : f32 to vector<8x1xf32>
    %63 = arith.addf %61, %62 : vector<8x1xf32>
    %64 = math.rsqrt %63 : vector<8x1xf32>
    %65 = arith.mulf %49, %64 : vector<8x1xf32>
    %66 = vector.broadcast %65 : vector<8x1xf32> to vector<8x256xf32>
    %67 = arith.mulf %48, %66 : vector<8x256xf32>
    %68 = arith.mulf %54, %65 : vector<8x1xf32>
    %69 = arith.subf %50, %68 : vector<8x1xf32>
    %70 = vector.broadcast %69 : vector<8x1xf32> to vector<8x256xf32>
    %71 = arith.addf %67, %70 : vector<8x256xf32>
    %cst_32 = arith.constant 0.000000e+00 : f32
    %72 = vector.broadcast %cst_32 : f32 to vector<8x256xf32>
    %73 = arith.cmpf ogt, %71, %72 : vector<8x256xf32>
    %cst_33 = arith.constant 0.00999999977 : f32
    %74 = vector.broadcast %cst_33 : f32 to vector<8x256xf32>
    %75 = arith.mulf %74, %71 : vector<8x256xf32>
    %76 = arith.select %73, %71, %75 : vector<8x256xi1>, vector<8x256xf32>
    %c17_i32_34 = arith.constant 17 : i32
    %77 = tpu.dynamic_rotate %76 by %c17_i32_34 dim 1 : vector<8x256xf32>, i32 -> vector<8x256xf32>
    %c0_35 = arith.constant 0 : index
    %c0_36 = arith.constant 0 : index
    %c0_37 = arith.constant 0 : index
    %78 = vector.load %arg1[%c0_35, %c0_36, %c0_37] : memref<9x1x256xf32, #tpu.memory_space<vmem>>, vector<1x1x256xf32>
    %79 = vector.shape_cast %78 : vector<1x1x256xf32> to vector<1x256xf32>
    %80 = vector.broadcast %79 : vector<1x256xf32> to vector<8x256xf32>
    %81 = arith.mulf %77, %80 : vector<8x256xf32>
    %c16_i32_38 = arith.constant 16 : i32
    %82 = tpu.dynamic_rotate %76 by %c16_i32_38 dim 1 : vector<8x256xf32>, i32 -> vector<8x256xf32>
    %c1_39 = arith.constant 1 : index
    %c0_40 = arith.constant 0 : index
    %c0_41 = arith.constant 0 : index
    %83 = vector.load %arg1[%c1_39, %c0_40, %c0_41] : memref<9x1x256xf32, #tpu.memory_space<vmem>>, vector<1x1x256xf32>
    %84 = vector.shape_cast %83 : vector<1x1x256xf32> to vector<1x256xf32>
    %85 = vector.broadcast %84 : vector<1x256xf32> to vector<8x256xf32>
    %86 = arith.mulf %82, %85 : vector<8x256xf32>
    %c15_i32_42 = arith.constant 15 : i32
    %87 = tpu.dynamic_rotate %76 by %c15_i32_42 dim 1 : vector<8x256xf32>, i32 -> vector<8x256xf32>
    %c2_43 = arith.constant 2 : index
    %c0_44 = arith.constant 0 : index
    %c0_45 = arith.constant 0 : index
    %88 = vector.load %arg1[%c2_43, %c0_44, %c0_45] : memref<9x1x256xf32, #tpu.memory_space<vmem>>, vector<1x1x256xf32>
    %89 = vector.shape_cast %88 : vector<1x1x256xf32> to vector<1x256xf32>
    %90 = vector.broadcast %89 : vector<1x256xf32> to vector<8x256xf32>
    %91 = arith.mulf %87, %90 : vector<8x256xf32>
    %c1_i32_46 = arith.constant 1 : i32
    %92 = tpu.dynamic_rotate %76 by %c1_i32_46 dim 1 : vector<8x256xf32>, i32 -> vector<8x256xf32>
    %c3_47 = arith.constant 3 : index
    %c0_48 = arith.constant 0 : index
    %c0_49 = arith.constant 0 : index
    %93 = vector.load %arg1[%c3_47, %c0_48, %c0_49] : memref<9x1x256xf32, #tpu.memory_space<vmem>>, vector<1x1x256xf32>
    %94 = vector.shape_cast %93 : vector<1x1x256xf32> to vector<1x256xf32>
    %95 = vector.broadcast %94 : vector<1x256xf32> to vector<8x256xf32>
    %96 = arith.mulf %92, %95 : vector<8x256xf32>
    %c255_i32_50 = arith.constant 255 : i32
    %97 = tpu.dynamic_rotate %76 by %c255_i32_50 dim 1 : vector<8x256xf32>, i32 -> vector<8x256xf32>
    %c5_51 = arith.constant 5 : index
    %c0_52 = arith.constant 0 : index
    %c0_53 = arith.constant 0 : index
    %98 = vector.load %arg1[%c5_51, %c0_52, %c0_53] : memref<9x1x256xf32, #tpu.memory_space<vmem>>, vector<1x1x256xf32>
    %99 = vector.shape_cast %98 : vector<1x1x256xf32> to vector<1x256xf32>
    %100 = vector.broadcast %99 : vector<1x256xf32> to vector<8x256xf32>
    %101 = arith.mulf %97, %100 : vector<8x256xf32>
    %c241_i32_54 = arith.constant 241 : i32
    %102 = tpu.dynamic_rotate %76 by %c241_i32_54 dim 1 : vector<8x256xf32>, i32 -> vector<8x256xf32>
    %c6_55 = arith.constant 6 : index
    %c0_56 = arith.constant 0 : index
    %c0_57 = arith.constant 0 : index
    %103 = vector.load %arg1[%c6_55, %c0_56, %c0_57] : memref<9x1x256xf32, #tpu.memory_space<vmem>>, vector<1x1x256xf32>
    %104 = vector.shape_cast %103 : vector<1x1x256xf32> to vector<1x256xf32>
    %105 = vector.broadcast %104 : vector<1x256xf32> to vector<8x256xf32>
    %106 = arith.mulf %102, %105 : vector<8x256xf32>
    %c240_i32_58 = arith.constant 240 : i32
    %107 = tpu.dynamic_rotate %76 by %c240_i32_58 dim 1 : vector<8x256xf32>, i32 -> vector<8x256xf32>
    %c7_59 = arith.constant 7 : index
    %c0_60 = arith.constant 0 : index
    %c0_61 = arith.constant 0 : index
    %108 = vector.load %arg1[%c7_59, %c0_60, %c0_61] : memref<9x1x256xf32, #tpu.memory_space<vmem>>, vector<1x1x256xf32>
    %109 = vector.shape_cast %108 : vector<1x1x256xf32> to vector<1x256xf32>
    %110 = vector.broadcast %109 : vector<1x256xf32> to vector<8x256xf32>
    %111 = arith.mulf %107, %110 : vector<8x256xf32>
    %c239_i32_62 = arith.constant 239 : i32
    %112 = tpu.dynamic_rotate %76 by %c239_i32_62 dim 1 : vector<8x256xf32>, i32 -> vector<8x256xf32>
    %c8_63 = arith.constant 8 : index
    %c0_64 = arith.constant 0 : index
    %c0_65 = arith.constant 0 : index
    %113 = vector.load %arg1[%c8_63, %c0_64, %c0_65] : memref<9x1x256xf32, #tpu.memory_space<vmem>>, vector<1x1x256xf32>
    %114 = vector.shape_cast %113 : vector<1x1x256xf32> to vector<1x256xf32>
    %115 = vector.broadcast %114 : vector<1x256xf32> to vector<8x256xf32>
    %116 = arith.mulf %112, %115 : vector<8x256xf32>
    %117 = tpu.concatenate %81, %86, %91, %96, %76, %101, %106, %111, %116 in 0 : vector<8x256xf32>, vector<8x256xf32>, vector<8x256xf32>, vector<8x256xf32>, vector<8x256xf32>, vector<8x256xf32>, vector<8x256xf32>, vector<8x256xf32>, vector<8x256xf32> -> vector<72x256xf32>
    %118 = arith.truncf %117 : vector<72x256xf32> to vector<72x256xbf16>
    %c0_66 = arith.constant 0 : index
    %c0_67 = arith.constant 0 : index
    %119 = vector.load %arg7[%c0_66, %c0_67] : memref<8x72xbf16, #tpu.memory_space<vmem>>, vector<8x72xbf16>
    %cst_68 = arith.constant dense<0.000000e+00> : vector<8x256xf32>
    %120 = tpu.matmul %119, %118, %cst_68 {dimension_numbers = #tpu.dot_dimension_numbers<[1], [0], [0], [1], [0, 0, 1, 1], [], []>} : vector<8x72xbf16>, vector<72x256xbf16>, vector<8x256xf32> -> vector<8x256xf32>
    %c0_69 = arith.constant 0 : index
    %c0_70 = arith.constant 0 : index
    %121 = vector.load %arg8[%c0_69, %c0_70] : memref<8x1xf32, #tpu.memory_space<vmem>>, vector<8x1xf32>
    %122 = vector.broadcast %121 : vector<8x1xf32> to vector<8x256xf32>
    %123 = arith.addf %120, %122 : vector<8x256xf32>
    %c0_71 = arith.constant 0 : index
    %c0_72 = arith.constant 0 : index
    %124 = vector.load %arg9[%c0_71, %c0_72] : memref<8x1xf32, #tpu.memory_space<vmem>>, vector<8x1xf32>
    %c0_73 = arith.constant 0 : index
    %c0_74 = arith.constant 0 : index
    %125 = vector.load %arg10[%c0_73, %c0_74] : memref<8x1xf32, #tpu.memory_space<vmem>>, vector<8x1xf32>
    %cst_75 = arith.constant dense<0.000000e+00> : vector<8xf32>
    %126 = vector.multi_reduction <add>, %123, %cst_75 [1] : vector<8x256xf32> to vector<8xf32>
    %127 = vector.shape_cast %126 : vector<8xf32> to vector<8x1xf32>
    %cst_76 = arith.constant 2.560000e+02 : f32
    %128 = vector.broadcast %cst_76 : f32 to vector<8x1xf32>
    %129 = arith.divf %127, %128 : vector<8x1xf32>
    %130 = arith.mulf %123, %123 : vector<8x256xf32>
    %cst_77 = arith.constant dense<0.000000e+00> : vector<8xf32>
    %131 = vector.multi_reduction <add>, %130, %cst_77 [1] : vector<8x256xf32> to vector<8xf32>
    %132 = vector.shape_cast %131 : vector<8xf32> to vector<8x1xf32>
    %cst_78 = arith.constant 2.560000e+02 : f32
    %133 = vector.broadcast %cst_78 : f32 to vector<8x1xf32>
    %134 = arith.divf %132, %133 : vector<8x1xf32>
    %135 = arith.mulf %129, %129 : vector<8x1xf32>
    %136 = arith.subf %134, %135 : vector<8x1xf32>
    %cst_79 = arith.constant 9.99999974E-6 : f32
    %137 = vector.broadcast %cst_79 : f32 to vector<8x1xf32>
    %138 = arith.addf %136, %137 : vector<8x1xf32>
    %139 = math.rsqrt %138 : vector<8x1xf32>
    %140 = arith.mulf %124, %139 : vector<8x1xf32>
    %141 = vector.broadcast %140 : vector<8x1xf32> to vector<8x256xf32>
    %142 = arith.mulf %123, %141 : vector<8x256xf32>
    %143 = arith.mulf %129, %140 : vector<8x1xf32>
    %144 = arith.subf %125, %143 : vector<8x1xf32>
    %145 = vector.broadcast %144 : vector<8x1xf32> to vector<8x256xf32>
    %146 = arith.addf %142, %145 : vector<8x256xf32>
    %c0_80 = arith.constant 0 : index
    %c0_81 = arith.constant 0 : index
    %147 = vector.load %arg11[%c0_80, %c0_81] : memref<8x4xbf16, #tpu.memory_space<vmem>>, vector<8x4xbf16>
    %148 = arith.truncf %1 : vector<4x256xf32> to vector<4x256xbf16>
    %cst_82 = arith.constant dense<0.000000e+00> : vector<8x256xf32>
    %149 = tpu.matmul %147, %148, %cst_82 {dimension_numbers = #tpu.dot_dimension_numbers<[1], [0], [0], [1], [0, 0, 1, 1], [], []>} : vector<8x4xbf16>, vector<4x256xbf16>, vector<8x256xf32> -> vector<8x256xf32>
    %c0_83 = arith.constant 0 : index
    %c0_84 = arith.constant 0 : index
    %150 = vector.load %arg12[%c0_83, %c0_84] : memref<8x1xf32, #tpu.memory_space<vmem>>, vector<8x1xf32>
    %151 = vector.broadcast %150 : vector<8x1xf32> to vector<8x256xf32>
    %152 = arith.addf %149, %151 : vector<8x256xf32>
    %153 = arith.addf %146, %152 : vector<8x256xf32>
    %cst_85 = arith.constant 0.000000e+00 : f32
    %154 = vector.broadcast %cst_85 : f32 to vector<8x256xf32>
    %155 = arith.cmpf ogt, %153, %154 : vector<8x256xf32>
    %cst_86 = arith.constant 0.00999999977 : f32
    %156 = vector.broadcast %cst_86 : f32 to vector<8x256xf32>
    %157 = arith.mulf %156, %153 : vector<8x256xf32>
    %158 = arith.select %155, %153, %157 : vector<8x256xi1>, vector<8x256xf32>
    %c0_87 = arith.constant 0 : index
    %c0_88 = arith.constant 0 : index
    %c0_89 = arith.constant 0 : index
    %159 = vector.load %arg13[%c0_87, %c0_88, %c0_89] : memref<2x8x256xf32, #tpu.memory_space<vmem>>, vector<1x8x256xf32>
    %160 = vector.shape_cast %159 : vector<1x8x256xf32> to vector<8x256xf32>
    %161 = vector.shape_cast %158 : vector<8x256xf32> to vector<1x8x256xf32>
    tpu.vector_store %arg13[%c0_87, %c0_88, %c0_89], %161 {strides = array<i32>} : memref<2x8x256xf32, #tpu.memory_space<vmem>>, vector<1x8x256xf32>,
    %c1_90 = arith.constant 1 : index
    %c0_91 = arith.constant 0 : index
    %c0_92 = arith.constant 0 : index
    %162 = vector.load %arg2[%c1_90, %c0_91, %c0_92] : memref<2x4x256xf32, #tpu.memory_space<vmem>>, vector<1x4x256xf32>
    %163 = vector.shape_cast %162 : vector<1x4x256xf32> to vector<4x256xf32>
    %c17_i32_93 = arith.constant 17 : i32
    %164 = tpu.dynamic_rotate %163 by %c17_i32_93 dim 1 : vector<4x256xf32>, i32 -> vector<4x256xf32>
    %c0_94 = arith.constant 0 : index
    %c0_95 = arith.constant 0 : index
    %c0_96 = arith.constant 0 : index
    %165 = vector.load %arg1[%c0_94, %c0_95, %c0_96] : memref<9x1x256xf32, #tpu.memory_space<vmem>>, vector<1x1x256xf32>
    %166 = vector.shape_cast %165 : vector<1x1x256xf32> to vector<1x256xf32>
    %167 = vector.broadcast %166 : vector<1x256xf32> to vector<4x256xf32>
    %168 = arith.mulf %164, %167 : vector<4x256xf32>
    %c16_i32_97 = arith.constant 16 : i32
    %169 = tpu.dynamic_rotate %163 by %c16_i32_97 dim 1 : vector<4x256xf32>, i32 -> vector<4x256xf32>
    %c1_98 = arith.constant 1 : index
    %c0_99 = arith.constant 0 : index
    %c0_100 = arith.constant 0 : index
    %170 = vector.load %arg1[%c1_98, %c0_99, %c0_100] : memref<9x1x256xf32, #tpu.memory_space<vmem>>, vector<1x1x256xf32>
    %171 = vector.shape_cast %170 : vector<1x1x256xf32> to vector<1x256xf32>
    %172 = vector.broadcast %171 : vector<1x256xf32> to vector<4x256xf32>
    %173 = arith.mulf %169, %172 : vector<4x256xf32>
    %c15_i32_101 = arith.constant 15 : i32
    %174 = tpu.dynamic_rotate %163 by %c15_i32_101 dim 1 : vector<4x256xf32>, i32 -> vector<4x256xf32>
    %c2_102 = arith.constant 2 : index
    %c0_103 = arith.constant 0 : index
    %c0_104 = arith.constant 0 : index
    %175 = vector.load %arg1[%c2_102, %c0_103, %c0_104] : memref<9x1x256xf32, #tpu.memory_space<vmem>>, vector<1x1x256xf32>
    %176 = vector.shape_cast %175 : vector<1x1x256xf32> to vector<1x256xf32>
    %177 = vector.broadcast %176 : vector<1x256xf32> to vector<4x256xf32>
    %178 = arith.mulf %174, %177 : vector<4x256xf32>
    %c1_i32_105 = arith.constant 1 : i32
    %179 = tpu.dynamic_rotate %163 by %c1_i32_105 dim 1 : vector<4x256xf32>, i32 -> vector<4x256xf32>
    %c3_106 = arith.constant 3 : index
    %c0_107 = arith.constant 0 : index
    %c0_108 = arith.constant 0 : index
    %180 = vector.load %arg1[%c3_106, %c0_107, %c0_108] : memref<9x1x256xf32, #tpu.memory_space<vmem>>, vector<1x1x256xf32>
    %181 = vector.shape_cast %180 : vector<1x1x256xf32> to vector<1x256xf32>
    %182 = vector.broadcast %181 : vector<1x256xf32> to vector<4x256xf32>
    %183 = arith.mulf %179, %182 : vector<4x256xf32>
    %c255_i32_109 = arith.constant 255 : i32
    %184 = tpu.dynamic_rotate %163 by %c255_i32_109 dim 1 : vector<4x256xf32>, i32 -> vector<4x256xf32>
    %c5_110 = arith.constant 5 : index
    %c0_111 = arith.constant 0 : index
    %c0_112 = arith.constant 0 : index
    %185 = vector.load %arg1[%c5_110, %c0_111, %c0_112] : memref<9x1x256xf32, #tpu.memory_space<vmem>>, vector<1x1x256xf32>
    %186 = vector.shape_cast %185 : vector<1x1x256xf32> to vector<1x256xf32>
    %187 = vector.broadcast %186 : vector<1x256xf32> to vector<4x256xf32>
    %188 = arith.mulf %184, %187 : vector<4x256xf32>
    %c241_i32_113 = arith.constant 241 : i32
    %189 = tpu.dynamic_rotate %163 by %c241_i32_113 dim 1 : vector<4x256xf32>, i32 -> vector<4x256xf32>
    %c6_114 = arith.constant 6 : index
    %c0_115 = arith.constant 0 : index
    %c0_116 = arith.constant 0 : index
    %190 = vector.load %arg1[%c6_114, %c0_115, %c0_116] : memref<9x1x256xf32, #tpu.memory_space<vmem>>, vector<1x1x256xf32>
    %191 = vector.shape_cast %190 : vector<1x1x256xf32> to vector<1x256xf32>
    %192 = vector.broadcast %191 : vector<1x256xf32> to vector<4x256xf32>
    %193 = arith.mulf %189, %192 : vector<4x256xf32>
    %c240_i32_117 = arith.constant 240 : i32
    %194 = tpu.dynamic_rotate %163 by %c240_i32_117 dim 1 : vector<4x256xf32>, i32 -> vector<4x256xf32>
    %c7_118 = arith.constant 7 : index
    %c0_119 = arith.constant 0 : index
    %c0_120 = arith.constant 0 : index
    %195 = vector.load %arg1[%c7_118, %c0_119, %c0_120] : memref<9x1x256xf32, #tpu.memory_space<vmem>>, vector<1x1x256xf32>
    %196 = vector.shape_cast %195 : vector<1x1x256xf32> to vector<1x256xf32>
    %197 = vector.broadcast %196 : vector<1x256xf32> to vector<4x256xf32>
    %198 = arith.mulf %194, %197 : vector<4x256xf32>
    %c239_i32_121 = arith.constant 239 : i32
    %199 = tpu.dynamic_rotate %163 by %c239_i32_121 dim 1 : vector<4x256xf32>, i32 -> vector<4x256xf32>
    %c8_122 = arith.constant 8 : index
    %c0_123 = arith.constant 0 : index
    %c0_124 = arith.constant 0 : index
    %200 = vector.load %arg1[%c8_122, %c0_123, %c0_124] : memref<9x1x256xf32, #tpu.memory_space<vmem>>, vector<1x1x256xf32>
    %201 = vector.shape_cast %200 : vector<1x1x256xf32> to vector<1x256xf32>
    %202 = vector.broadcast %201 : vector<1x256xf32> to vector<4x256xf32>
    %203 = arith.mulf %199, %202 : vector<4x256xf32>
    %204 = tpu.concatenate %168, %173, %178, %183, %163, %188, %193, %198, %203 in 0 : vector<4x256xf32>, vector<4x256xf32>, vector<4x256xf32>, vector<4x256xf32>, vector<4x256xf32>, vector<4x256xf32>, vector<4x256xf32>, vector<4x256xf32>, vector<4x256xf32> -> vector<36x256xf32>
    %205 = arith.truncf %204 : vector<36x256xf32> to vector<36x256xbf16>
    %c0_125 = arith.constant 0 : index
    %c0_126 = arith.constant 0 : index
    %206 = vector.load %arg3[%c0_125, %c0_126] : memref<8x36xbf16, #tpu.memory_space<vmem>>, vector<8x36xbf16>
    %cst_127 = arith.constant dense<0.000000e+00> : vector<8x256xf32>
    %207 = tpu.matmul %206, %205, %cst_127 {dimension_numbers = #tpu.dot_dimension_numbers<[1], [0], [0], [1], [0, 0, 1, 1], [], []>} : vector<8x36xbf16>, vector<36x256xbf16>, vector<8x256xf32> -> vector<8x256xf32>
    %c0_128 = arith.constant 0 : index
    %c0_129 = arith.constant 0 : index
    %208 = vector.load %arg4[%c0_128, %c0_129] : memref<8x1xf32, #tpu.memory_space<vmem>>, vector<8x1xf32>
    %209 = vector.broadcast %208 : vector<8x1xf32> to vector<8x256xf32>
    %210 = arith.addf %207, %209 : vector<8x256xf32>
    %c0_130 = arith.constant 0 : index
    %c0_131 = arith.constant 0 : index
    %211 = vector.load %arg5[%c0_130, %c0_131] : memref<8x1xf32, #tpu.memory_space<vmem>>, vector<8x1xf32>
    %c0_132 = arith.constant 0 : index
    %c0_133 = arith.constant 0 : index
    %212 = vector.load %arg6[%c0_132, %c0_133] : memref<8x1xf32, #tpu.memory_space<vmem>>, vector<8x1xf32>
    %cst_134 = arith.constant dense<0.000000e+00> : vector<8xf32>
    %213 = vector.multi_reduction <add>, %210, %cst_134 [1] : vector<8x256xf32> to vector<8xf32>
    %214 = vector.shape_cast %213 : vector<8xf32> to vector<8x1xf32>
    %cst_135 = arith.constant 2.560000e+02 : f32
    %215 = vector.broadcast %cst_135 : f32 to vector<8x1xf32>
    %216 = arith.divf %214, %215 : vector<8x1xf32>
    %217 = arith.mulf %210, %210 : vector<8x256xf32>
    %cst_136 = arith.constant dense<0.000000e+00> : vector<8xf32>
    %218 = vector.multi_reduction <add>, %217, %cst_136 [1] : vector<8x256xf32> to vector<8xf32>
    %219 = vector.shape_cast %218 : vector<8xf32> to vector<8x1xf32>
    %cst_137 = arith.constant 2.560000e+02 : f32
    %220 = vector.broadcast %cst_137 : f32 to vector<8x1xf32>
    %221 = arith.divf %219, %220 : vector<8x1xf32>
    %222 = arith.mulf %216, %216 : vector<8x1xf32>
    %223 = arith.subf %221, %222 : vector<8x1xf32>
    %cst_138 = arith.constant 9.99999974E-6 : f32
    %224 = vector.broadcast %cst_138 : f32 to vector<8x1xf32>
    %225 = arith.addf %223, %224 : vector<8x1xf32>
    %226 = math.rsqrt %225 : vector<8x1xf32>
    %227 = arith.mulf %211, %226 : vector<8x1xf32>
    %228 = vector.broadcast %227 : vector<8x1xf32> to vector<8x256xf32>
    %229 = arith.mulf %210, %228 : vector<8x256xf32>
    %230 = arith.mulf %216, %227 : vector<8x1xf32>
    %231 = arith.subf %212, %230 : vector<8x1xf32>
    %232 = vector.broadcast %231 : vector<8x1xf32> to vector<8x256xf32>
    %233 = arith.addf %229, %232 : vector<8x256xf32>
    %cst_139 = arith.constant 0.000000e+00 : f32
    %234 = vector.broadcast %cst_139 : f32 to vector<8x256xf32>
    %235 = arith.cmpf ogt, %233, %234 : vector<8x256xf32>
    %cst_140 = arith.constant 0.00999999977 : f32
    %236 = vector.broadcast %cst_140 : f32 to vector<8x256xf32>
    %237 = arith.mulf %236, %233 : vector<8x256xf32>
    %238 = arith.select %235, %233, %237 : vector<8x256xi1>, vector<8x256xf32>
    %c17_i32_141 = arith.constant 17 : i32
    %239 = tpu.dynamic_rotate %238 by %c17_i32_141 dim 1 : vector<8x256xf32>, i32 -> vector<8x256xf32>
    %c0_142 = arith.constant 0 : index
    %c0_143 = arith.constant 0 : index
    %c0_144 = arith.constant 0 : index
    %240 = vector.load %arg1[%c0_142, %c0_143, %c0_144] : memref<9x1x256xf32, #tpu.memory_space<vmem>>, vector<1x1x256xf32>
    %241 = vector.shape_cast %240 : vector<1x1x256xf32> to vector<1x256xf32>
    %242 = vector.broadcast %241 : vector<1x256xf32> to vector<8x256xf32>
    %243 = arith.mulf %239, %242 : vector<8x256xf32>
    %c16_i32_145 = arith.constant 16 : i32
    %244 = tpu.dynamic_rotate %238 by %c16_i32_145 dim 1 : vector<8x256xf32>, i32 -> vector<8x256xf32>
    %c1_146 = arith.constant 1 : index
    %c0_147 = arith.constant 0 : index
    %c0_148 = arith.constant 0 : index
    %245 = vector.load %arg1[%c1_146, %c0_147, %c0_148] : memref<9x1x256xf32, #tpu.memory_space<vmem>>, vector<1x1x256xf32>
    %246 = vector.shape_cast %245 : vector<1x1x256xf32> to vector<1x256xf32>
    %247 = vector.broadcast %246 : vector<1x256xf32> to vector<8x256xf32>
    %248 = arith.mulf %244, %247 : vector<8x256xf32>
    %c15_i32_149 = arith.constant 15 : i32
    %249 = tpu.dynamic_rotate %238 by %c15_i32_149 dim 1 : vector<8x256xf32>, i32 -> vector<8x256xf32>
    %c2_150 = arith.constant 2 : index
    %c0_151 = arith.constant 0 : index
    %c0_152 = arith.constant 0 : index
    %250 = vector.load %arg1[%c2_150, %c0_151, %c0_152] : memref<9x1x256xf32, #tpu.memory_space<vmem>>, vector<1x1x256xf32>
    %251 = vector.shape_cast %250 : vector<1x1x256xf32> to vector<1x256xf32>
    %252 = vector.broadcast %251 : vector<1x256xf32> to vector<8x256xf32>
    %253 = arith.mulf %249, %252 : vector<8x256xf32>
    %c1_i32_153 = arith.constant 1 : i32
    %254 = tpu.dynamic_rotate %238 by %c1_i32_153 dim 1 : vector<8x256xf32>, i32 -> vector<8x256xf32>
    %c3_154 = arith.constant 3 : index
    %c0_155 = arith.constant 0 : index
    %c0_156 = arith.constant 0 : index
    %255 = vector.load %arg1[%c3_154, %c0_155, %c0_156] : memref<9x1x256xf32, #tpu.memory_space<vmem>>, vector<1x1x256xf32>
    %256 = vector.shape_cast %255 : vector<1x1x256xf32> to vector<1x256xf32>
    %257 = vector.broadcast %256 : vector<1x256xf32> to vector<8x256xf32>
    %258 = arith.mulf %254, %257 : vector<8x256xf32>
    %c255_i32_157 = arith.constant 255 : i32
    %259 = tpu.dynamic_rotate %238 by %c255_i32_157 dim 1 : vector<8x256xf32>, i32 -> vector<8x256xf32>
    %c5_158 = arith.constant 5 : index
    %c0_159 = arith.constant 0 : index
    %c0_160 = arith.constant 0 : index
    %260 = vector.load %arg1[%c5_158, %c0_159, %c0_160] : memref<9x1x256xf32, #tpu.memory_space<vmem>>, vector<1x1x256xf32>
    %261 = vector.shape_cast %260 : vector<1x1x256xf32> to vector<1x256xf32>
    %262 = vector.broadcast %261 : vector<1x256xf32> to vector<8x256xf32>
    %263 = arith.mulf %259, %262 : vector<8x256xf32>
    %c241_i32_161 = arith.constant 241 : i32
    %264 = tpu.dynamic_rotate %238 by %c241_i32_161 dim 1 : vector<8x256xf32>, i32 -> vector<8x256xf32>
    %c6_162 = arith.constant 6 : index
    %c0_163 = arith.constant 0 : index
    %c0_164 = arith.constant 0 : index
    %265 = vector.load %arg1[%c6_162, %c0_163, %c0_164] : memref<9x1x256xf32, #tpu.memory_space<vmem>>, vector<1x1x256xf32>
    %266 = vector.shape_cast %265 : vector<1x1x256xf32> to vector<1x256xf32>
    %267 = vector.broadcast %266 : vector<1x256xf32> to vector<8x256xf32>
    %268 = arith.mulf %264, %267 : vector<8x256xf32>
    %c240_i32_165 = arith.constant 240 : i32
    %269 = tpu.dynamic_rotate %238 by %c240_i32_165 dim 1 : vector<8x256xf32>, i32 -> vector<8x256xf32>
    %c7_166 = arith.constant 7 : index
    %c0_167 = arith.constant 0 : index
    %c0_168 = arith.constant 0 : index
    %270 = vector.load %arg1[%c7_166, %c0_167, %c0_168] : memref<9x1x256xf32, #tpu.memory_space<vmem>>, vector<1x1x256xf32>
    %271 = vector.shape_cast %270 : vector<1x1x256xf32> to vector<1x256xf32>
    %272 = vector.broadcast %271 : vector<1x256xf32> to vector<8x256xf32>
    %273 = arith.mulf %269, %272 : vector<8x256xf32>
    %c239_i32_169 = arith.constant 239 : i32
    %274 = tpu.dynamic_rotate %238 by %c239_i32_169 dim 1 : vector<8x256xf32>, i32 -> vector<8x256xf32>
    %c8_170 = arith.constant 8 : index
    %c0_171 = arith.constant 0 : index
    %c0_172 = arith.constant 0 : index
    %275 = vector.load %arg1[%c8_170, %c0_171, %c0_172] : memref<9x1x256xf32, #tpu.memory_space<vmem>>, vector<1x1x256xf32>
    %276 = vector.shape_cast %275 : vector<1x1x256xf32> to vector<1x256xf32>
    %277 = vector.broadcast %276 : vector<1x256xf32> to vector<8x256xf32>
    %278 = arith.mulf %274, %277 : vector<8x256xf32>
    %279 = tpu.concatenate %243, %248, %253, %258, %238, %263, %268, %273, %278 in 0 : vector<8x256xf32>, vector<8x256xf32>, vector<8x256xf32>, vector<8x256xf32>, vector<8x256xf32>, vector<8x256xf32>, vector<8x256xf32>, vector<8x256xf32>, vector<8x256xf32> -> vector<72x256xf32>
    %280 = arith.truncf %279 : vector<72x256xf32> to vector<72x256xbf16>
    %c0_173 = arith.constant 0 : index
    %c0_174 = arith.constant 0 : index
    %281 = vector.load %arg7[%c0_173, %c0_174] : memref<8x72xbf16, #tpu.memory_space<vmem>>, vector<8x72xbf16>
    %cst_175 = arith.constant dense<0.000000e+00> : vector<8x256xf32>
    %282 = tpu.matmul %281, %280, %cst_175 {dimension_numbers = #tpu.dot_dimension_numbers<[1], [0], [0], [1], [0, 0, 1, 1], [], []>} : vector<8x72xbf16>, vector<72x256xbf16>, vector<8x256xf32> -> vector<8x256xf32>
    %c0_176 = arith.constant 0 : index
    %c0_177 = arith.constant 0 : index
    %283 = vector.load %arg8[%c0_176, %c0_177] : memref<8x1xf32, #tpu.memory_space<vmem>>, vector<8x1xf32>
    %284 = vector.broadcast %283 : vector<8x1xf32> to vector<8x256xf32>
    %285 = arith.addf %282, %284 : vector<8x256xf32>
    %c0_178 = arith.constant 0 : index
    %c0_179 = arith.constant 0 : index
    %286 = vector.load %arg9[%c0_178, %c0_179] : memref<8x1xf32, #tpu.memory_space<vmem>>, vector<8x1xf32>
    %c0_180 = arith.constant 0 : index
    %c0_181 = arith.constant 0 : index
    %287 = vector.load %arg10[%c0_180, %c0_181] : memref<8x1xf32, #tpu.memory_space<vmem>>, vector<8x1xf32>
    %cst_182 = arith.constant dense<0.000000e+00> : vector<8xf32>
    %288 = vector.multi_reduction <add>, %285, %cst_182 [1] : vector<8x256xf32> to vector<8xf32>
    %289 = vector.shape_cast %288 : vector<8xf32> to vector<8x1xf32>
    %cst_183 = arith.constant 2.560000e+02 : f32
    %290 = vector.broadcast %cst_183 : f32 to vector<8x1xf32>
    %291 = arith.divf %289, %290 : vector<8x1xf32>
    %292 = arith.mulf %285, %285 : vector<8x256xf32>
    %cst_184 = arith.constant dense<0.000000e+00> : vector<8xf32>
    %293 = vector.multi_reduction <add>, %292, %cst_184 [1] : vector<8x256xf32> to vector<8xf32>
    %294 = vector.shape_cast %293 : vector<8xf32> to vector<8x1xf32>
    %cst_185 = arith.constant 2.560000e+02 : f32
    %295 = vector.broadcast %cst_185 : f32 to vector<8x1xf32>
    %296 = arith.divf %294, %295 : vector<8x1xf32>
    %297 = arith.mulf %291, %291 : vector<8x1xf32>
    %298 = arith.subf %296, %297 : vector<8x1xf32>
    %cst_186 = arith.constant 9.99999974E-6 : f32
    %299 = vector.broadcast %cst_186 : f32 to vector<8x1xf32>
    %300 = arith.addf %298, %299 : vector<8x1xf32>
    %301 = math.rsqrt %300 : vector<8x1xf32>
    %302 = arith.mulf %286, %301 : vector<8x1xf32>
    %303 = vector.broadcast %302 : vector<8x1xf32> to vector<8x256xf32>
    %304 = arith.mulf %285, %303 : vector<8x256xf32>
    %305 = arith.mulf %291, %302 : vector<8x1xf32>
    %306 = arith.subf %287, %305 : vector<8x1xf32>
    %307 = vector.broadcast %306 : vector<8x1xf32> to vector<8x256xf32>
    %308 = arith.addf %304, %307 : vector<8x256xf32>
    %c0_187 = arith.constant 0 : index
    %c0_188 = arith.constant 0 : index
    %309 = vector.load %arg11[%c0_187, %c0_188] : memref<8x4xbf16, #tpu.memory_space<vmem>>, vector<8x4xbf16>
    %310 = arith.truncf %163 : vector<4x256xf32> to vector<4x256xbf16>
    %cst_189 = arith.constant dense<0.000000e+00> : vector<8x256xf32>
    %311 = tpu.matmul %309, %310, %cst_189 {dimension_numbers = #tpu.dot_dimension_numbers<[1], [0], [0], [1], [0, 0, 1, 1], [], []>} : vector<8x4xbf16>, vector<4x256xbf16>, vector<8x256xf32> -> vector<8x256xf32>
    %c0_190 = arith.constant 0 : index
    %c0_191 = arith.constant 0 : index
    %312 = vector.load %arg12[%c0_190, %c0_191] : memref<8x1xf32, #tpu.memory_space<vmem>>, vector<8x1xf32>
    %313 = vector.broadcast %312 : vector<8x1xf32> to vector<8x256xf32>
    %314 = arith.addf %311, %313 : vector<8x256xf32>
    %315 = arith.addf %308, %314 : vector<8x256xf32>
    %cst_192 = arith.constant 0.000000e+00 : f32
    %316 = vector.broadcast %cst_192 : f32 to vector<8x256xf32>
    %317 = arith.cmpf ogt, %315, %316 : vector<8x256xf32>
    %cst_193 = arith.constant 0.00999999977 : f32
    %318 = vector.broadcast %cst_193 : f32 to vector<8x256xf32>
    %319 = arith.mulf %318, %315 : vector<8x256xf32>
    %320 = arith.select %317, %315, %319 : vector<8x256xi1>, vector<8x256xf32>
    %c1_194 = arith.constant 1 : index
    %c0_195 = arith.constant 0 : index
    %c0_196 = arith.constant 0 : index
    %321 = vector.load %arg13[%c1_194, %c0_195, %c0_196] : memref<2x8x256xf32, #tpu.memory_space<vmem>>, vector<1x8x256xf32>
    %322 = vector.shape_cast %321 : vector<1x8x256xf32> to vector<8x256xf32>
    %323 = vector.shape_cast %320 : vector<8x256xf32> to vector<1x8x256xf32>
    tpu.vector_store %arg13[%c1_194, %c0_195, %c0_196], %323 {strides = array<i32>} : memref<2x8x256xf32, #tpu.memory_space<vmem>>, vector<1x8x256xf32>,
    return
  }
  func.func @transform_0(%arg0: i32) -> (i32, i32, i32) {
    %c0_i32 = arith.constant 0 : i32
    %c0_i32_0 = arith.constant 0 : i32
    %c0_i32_1 = arith.constant 0 : i32
    %c0_i32_2 = arith.constant 0 : i32
    return %c0_i32, %c0_i32_0, %c0_i32_1 : i32, i32, i32
  }
  func.func @transform_1(%arg0: i32) -> (i32, i32, i32) {
    %c0_i32 = arith.constant 0 : i32
    %c0_i32_0 = arith.constant 0 : i32
    %c0_i32_1 = arith.constant 0 : i32
    return %arg0, %c0_i32, %c0_i32_0 : i32, i32, i32
  }
  func.func @transform_2(%arg0: i32) -> (i32, i32) {
    %c0_i32 = arith.constant 0 : i32
    %c0_i32_0 = arith.constant 0 : i32
    %c0_i32_1 = arith.constant 0 : i32
    return %c0_i32, %c0_i32_0 : i32, i32
  }
  func.func @transform_3(%arg0: i32) -> (i32, i32) {
    %c0_i32 = arith.constant 0 : i32
    %c0_i32_0 = arith.constant 0 : i32
    %c0_i32_1 = arith.constant 0 : i32
    return %c0_i32, %c0_i32_0 : i32, i32
  }
  func.func @transform_4(%arg0: i32) -> (i32, i32) {
    %c0_i32 = arith.constant 0 : i32
    %c0_i32_0 = arith.constant 0 : i32
    %c0_i32_1 = arith.constant 0 : i32
    return %c0_i32, %c0_i32_0 : i32, i32
  }
  func.func @transform_5(%arg0: i32) -> (i32, i32) {
    %c0_i32 = arith.constant 0 : i32
    %c0_i32_0 = arith.constant 0 : i32
    %c0_i32_1 = arith.constant 0 : i32
    return %c0_i32, %c0_i32_0 : i32, i32
  }
  func.func @transform_6(%arg0: i32) -> (i32, i32) {
    %c0_i32 = arith.constant 0 : i32
    %c0_i32_0 = arith.constant 0 : i32
    %c0_i32_1 = arith.constant 0 : i32
    return %c0_i32, %c0_i32_0 : i32, i32
  }
  func.func @transform_7(%arg0: i32) -> (i32, i32) {
    %c0_i32 = arith.constant 0 : i32
    %c0_i32_0 = arith.constant 0 : i32
    %c0_i32_1 = arith.constant 0 : i32
    return %c0_i32, %c0_i32_0 : i32, i32
  }
  func.func @transform_8(%arg0: i32) -> (i32, i32) {
    %c0_i32 = arith.constant 0 : i32
    %c0_i32_0 = arith.constant 0 : i32
    %c0_i32_1 = arith.constant 0 : i32
    return %c0_i32, %c0_i32_0 : i32, i32
  }
  func.func @transform_9(%arg0: i32) -> (i32, i32) {
    %c0_i32 = arith.constant 0 : i32
    %c0_i32_0 = arith.constant 0 : i32
    %c0_i32_1 = arith.constant 0 : i32
    return %c0_i32, %c0_i32_0 : i32, i32
  }
  func.func @transform_10(%arg0: i32) -> (i32, i32) {
    %c0_i32 = arith.constant 0 : i32
    %c0_i32_0 = arith.constant 0 : i32
    %c0_i32_1 = arith.constant 0 : i32
    return %c0_i32, %c0_i32_0 : i32, i32
  }
  func.func @transform_11(%arg0: i32) -> (i32, i32) {
    %c0_i32 = arith.constant 0 : i32
    %c0_i32_0 = arith.constant 0 : i32
    %c0_i32_1 = arith.constant 0 : i32
    return %c0_i32, %c0_i32_0 : i32, i32
  }
  func.func @transform_12(%arg0: i32) -> (i32, i32, i32) {
    %c0_i32 = arith.constant 0 : i32
    %c0_i32_0 = arith.constant 0 : i32
    %c0_i32_1 = arith.constant 0 : i32
    return %arg0, %c0_i32, %c0_i32_0 : i32, i32, i32
  }
}

</mosaic_0001>

<bundles_post_ra>
// kernel: basic_res_block_forward.1
= control target key start
LH: loop header
LB: loop body
LE: loop exit
PB: predicated region body
PF: predicated region fallthrough
CT: control target
= control target key end

     0   :  { %s1137_s23 = smov 17   ;;  %s1138_s24 = smov 16   ;;  %v53_v29 = vlaneseq  ;;  %vm242_vm6 = vcmask 1043456   ;;  %vm268_vm8 = vcmask 1041408   ;;  %vm264_vm10 = vcmask 293888   ;;  %s1961_s1 = inlined_call_operand.vmem [shape: f32[2,4,256], index: 1, kind: input, shape index: {}]   ;;  %s1962_s0 = inlined_call_operand.vmem [shape: f32[9,1,256], index: 0, kind: input, shape index: {}]   ;;  %s1963_s3 = inlined_call_operand.vmem [shape: f32[8,1], index: 3, kind: input, shape index: {}]   ;;  %s1964_s2 = inlined_call_operand.vmem [shape: bf16[8,36], index: 2, kind: input, shape index: {}]   ;;  %s1965_s4 = inlined_call_operand.vmem [shape: f32[8,1], index: 4, kind: input, shape index: {}]   ;;  %s1966_s5 = inlined_call_operand.vmem [shape: f32[8,1], index: 5, kind: input, shape index: {}]   ;;  %s1967_s6 = inlined_call_operand.vmem [shape: bf16[8,72], index: 6, kind: input, shape index: {}]   ;;  %s1968_s7 = inlined_call_operand.vmem [shape: f32[8,1], index: 7, kind: input, shape index: {}]   ;;  %s1969_s10 = inlined_call_operand.vmem [shape: bf16[8,4], index: 10, kind: input, shape index: {}]   ;;  %s1970_s8 = inlined_call_operand.vmem [shape: f32[8,1], index: 8, kind: input, shape index: {}]   ;;  %s1971_s9 = inlined_call_operand.vmem [shape: f32[8,1], index: 9, kind: input, shape index: {}]   ;;  %s1972_s11 = inlined_call_operand.vmem [shape: f32[8,1], index: 11, kind: input, shape index: {}]   ;;  %s1973_s12 = inlined_call_operand.vmem [shape: f32[2,8,256], index: 12, kind: output, shape index: {}]  }
   0x1   :  { %v42_v0 = vld [vmem:[%s1961_s1] sm:$0xff]  ;;  %s1139_s25 = smov 1   ;;  %s1140_s26 = smov 127   ;;  %v1244_v25 = vld [vmem:[%s1961_s1 + $0x8] sm:$0xff]  ;;  %v1314_v58 = vld [vmem:[%s1962_s0 + $0x10] sm:$0x3] }
   0x2   :  { %44 = vst [vmem:[#allocation1] ss:$2 sm:$0xff] %v42_v0  ;;  %s1141_s27 = smov 113   ;;  %s1142_s28 = smov 112   ;;  %v1251_v32 = vand.u32 127, %v53_v29 }
   0x3   :  { %s1143_s29 = smov 111   ;;  %s1144_s30 = smov 15   ;;  %v1256_v33 = vld [vmem:[%s1962_s0 + $0x6] sm:$0x3]  ;;  %v1265_v36 = vld [vmem:[%s1962_s0 + $0x2] sm:$0x3] }
   0x4   :  { %v1271_v37 = vld [vmem:[%s1962_s0 + $0xa] sm:$0x3]  ;;  %v1276_v38 = vld [vmem:[%s1962_s0 + $0xe] sm:$0x3]  ;;  %v123_v39 = vperm.slane %v1256_v33, 0  ;;  %v124_v40 = vperm.slane %v1256_v33, 1 }
   0x5   :  { %vm180_vm0 = vcmp.lt.s32.totalorder %v1251_v32, 112  ;;  %vm117_vm1 = vcmp.lt.s32.totalorder %v1251_v32, 1  ;;  %vm75_vm2 = vcmp.lt.s32.totalorder %v1251_v32, 16  ;;  %v81_v42 = vperm.slane %v1265_v36, 0  ;;  %v1288_v43 = vld [vmem:[%s1962_s0 + $0xc] sm:$0x3] }
   0x6   :  { %vm138_vm3 = vcmp.lt.s32.totalorder %v1251_v32, 127  ;;  %v82_v44 = vperm.slane %v1265_v36, 1  ;;  %v144_v45 = vperm.slane %v1271_v37, 0  ;;  %v186_v46 = vperm.slane %v1276_v38, 0  ;;  %v1309_v57 = vld [vmem:[%s1962_s0] sm:$0x3] }
   0x7   :  { %v187_v47 = vperm.slane %v1276_v38, 1  ;;  %v145_v50 = vperm.slane %v1271_v37, 1  ;;  %vm159_vm4 = vcmp.lt.s32.totalorder %v1251_v32, 113  ;;  %v165_v55 = vperm.slane %v1288_v43, 0 }
   0x8   :  { %v166_v56 = vperm.slane %v1288_v43, 1  ;;  %vm55_vm5 = vcmp.lt.s32.totalorder %v1251_v32, 17  ;;  %vm201_vm7 = vcmp.lt.s32.totalorder %v1251_v32, 111  ;;  %vm96_vm9 = vcmp.lt.s32.totalorder %v1251_v32, 15 }
   0x9   :  { %v45_v1 = vld.sshfl [vmem:[#allocation1] sm:$0xff pattern:$0x75316420]  ;;  %v46_v2 = vld.sshfl [vmem:[#allocation1 + $0x8] sm:$0xff pattern:$0x75316420] }
   0xa   :  { %66 = vst [vmem:[#allocation1] ss:$2 sm:$0xff] %v42_v0  ;;  %49 = vrot.lane.b32.xlu0 %v45_v1, %s1137_s23  ;;  %v1333_v1 = vld [vmem:[%s1963_s3] sm:$0xff] }
  0x11   :  { %v67_v3 = vld.sshfl [vmem:[#allocation1] sm:$0xff pattern:$0x75316420]  ;;  %v68_v4 = vld.sshfl [vmem:[#allocation1 + $0x8] sm:$0xff pattern:$0x75316420] }
  0x12   :  { %87 = vst [vmem:[#allocation1] ss:$2 sm:$0xff] %v42_v0  ;;  %73 = vrot.lane.b32.xlu0 %v68_v4, %s1138_s24  ;;  %71 = vrot.lane.b32.xlu2 %v67_v3, %s1138_s24  ;;  %v60_v4 = vperm.slane %v1309_v57, 0 }
  0x19   :  { %v88_v5 = vld.sshfl [vmem:[#allocation1] sm:$0xff pattern:$0x75316420]  ;;  %v89_v6 = vld.sshfl [vmem:[#allocation1 + $0x8] sm:$0xff pattern:$0x75316420] }
  0x1a   :  { %108 = vst [vmem:[#allocation1] ss:$2 sm:$0xff] %v42_v0 }
  0x21   :  { %v109_v7 = vld.sshfl [vmem:[#allocation1] sm:$0xff pattern:$0x75316420]  ;;  %v110_v8 = vld.sshfl [vmem:[#allocation1 + $0x8] sm:$0xff pattern:$0x75316420] }
  0x22   :  { %113 = vrot.lane.b32.xlu1 %v109_v7, %s1139_s25  ;;  %129 = vst [vmem:[#allocation1] ss:$2 sm:$0xff] %v42_v0  ;;  %115 = vrot.lane.b32.xlu2 %v110_v8, %s1139_s25  ;;  %v207_v7 = vperm.slane %v1314_v58, 0  ;;  %v208_v8 = vperm.slane %v1314_v58, 1 }
  0x29   :  { %v130_v9 = vld.sshfl [vmem:[#allocation1] sm:$0xff pattern:$0x75316420]  ;;  %v131_v10 = vld.sshfl [vmem:[#allocation1 + $0x8] sm:$0xff pattern:$0x75316420] }
  0x2a   :  { %134 = vrot.lane.b32.xlu1 %v130_v9, %s1140_s26  ;;  %150 = vst [vmem:[#allocation1] ss:$2 sm:$0xff] %v42_v0 }
  0x31   :  { %v152_v11 = vld.sshfl [vmem:[#allocation1 + $0x8] sm:$0xff pattern:$0x75316420]  ;;  %v151_v12 = vld.sshfl [vmem:[#allocation1] sm:$0xff pattern:$0x75316420] }
  0x32   :  { %136 = vrot.lane.b32.xlu1 %v131_v10, %s1140_s26  ;;  %155 = vrot.lane.b32.xlu0 %v151_v12, %s1141_s27  ;;  %171 = vst [vmem:[#allocation1] ss:$2 sm:$0xff] %v42_v0 }
  0x39   :  { %v172_v13 = vld.sshfl [vmem:[#allocation1] sm:$0xff pattern:$0x75316420]  ;;  %v173_v14 = vld.sshfl [vmem:[#allocation1 + $0x8] sm:$0xff pattern:$0x75316420] }
  0x3a   :  { %157 = vrot.lane.b32.xlu1 %v152_v11, %s1141_s27  ;;  %192 = vst [vmem:[#allocation1] ss:$2 sm:$0xff] %v42_v0  ;;  %176 = vrot.lane.b32.xlu2 %v172_v13, %s1142_s28 }
  0x41   :  { %v193_v15 = vld.sshfl [vmem:[#allocation1] sm:$0xff pattern:$0x75316420]  ;;  %v194_v16 = vld.sshfl [vmem:[#allocation1 + $0x8] sm:$0xff pattern:$0x75316420] }
  0x42   :  { %51 = vrot.lane.b32.xlu1 %v46_v2, %s1137_s23  ;;  %197 = vrot.lane.b32.xlu0 %v193_v15, %s1143_s29  ;;  %225 = vst [vmem:[#allocation1] ss:$2 sm:$0xff] %v42_v0 }
  0x43   :  { %178 = vrot.lane.b32.xlu2 %v173_v14, %s1142_s28 }
  0x49   :  { %v1231_v17 = vld.sshfl [vmem:[#allocation1] sm:$0xff pattern:$0x75316420]  ;;  %v1233_v18 = vld.sshfl [vmem:[#allocation1 + $0x8] sm:$0xff pattern:$0x75316420] }
  0x4a   :  { %199 = vrot.lane.b32.xlu0 %v194_v16, %s1143_s29  ;;  %516 = vst [vmem:[#allocation1] ss:$2 sm:$0xff] %v42_v0 }
  0x4b   :  { %92 = vrot.lane.b32.xlu2 %v88_v5, %s1144_s30  ;;  %v1145_v5 = vmov 0  }
  0x4c   :  { %1124 = vset.pattern.permute.xlu1 %v1145_v5  ;;  %1125 = vset.pattern.permute.xlu2 %v1145_v5 }
  0x4d   :  { %261 = vperm.xlu1 %1124, %v1333_v1   ;;  %1126 = vset.pattern.permute.xlu0 %v1145_v5 }
  0x51   :  { %v1246_v26 = vld.sshfl [vmem:[#allocation1] sm:$0xff pattern:$0x75316420]  ;;  %v1248_v27 = vld.sshfl [vmem:[#allocation1 + $0x8] sm:$0xff pattern:$0x75316420] }
  0x52   :  { %94 = vrot.lane.b32.xlu0 %v89_v6, %s1144_s30  ;;  %578 = vst [vmem:[#allocation1] ss:$2 sm:$0xff] %v1244_v25  ;;  %v1974_v6 = vperm.slane %v1309_v57, 1 }
  0x59   :  { %v1258_v34 = vld.sshfl [vmem:[#allocation1] sm:$0xff pattern:$0x75316420]  ;;  %v1260_v35 = vld.sshfl [vmem:[#allocation1 + $0x8] sm:$0xff pattern:$0x75316420] }
  0x5a   :  { %597 = vst [vmem:[#allocation1] ss:$2 sm:$0xff] %v1244_v25 }
  0x61   :  { %v1320_v61 = vld.sshfl [vmem:[#allocation1] sm:$0xff pattern:$0x75316420]  ;;  %v1322_v62 = vld.sshfl [vmem:[#allocation1 + $0x8] sm:$0xff pattern:$0x75316420] }
  0x62   :  { %616 = vst [vmem:[#allocation1] ss:$2 sm:$0xff] %v1244_v25 }
  0x6c   :  { %v72_v19 = vpop.permute.xlu2 %71 }
  0x7c   :  { %v1237_v21 = vpop.permute.xlu0 %49  ;;  %v1239_v22 = vpop.permute.xlu2 %115 }
  0x84   :  { %v74_v24 = vpop.permute.xlu0 %73 }
  0x85   :  { %v76_v59 = vsel %vm75_vm2, %v72_v19, %v74_v24  ;;  %v77_v60 = vsel %vm75_vm2, %v74_v24, %v72_v19 }
  0x94   :  { %v1235_v20 = vpop.permute.xlu1 %113  ;;  %v177_v28 = vpop.permute.xlu2 %176 }
  0x95   :  { %v118_v9 = vsel %vm117_vm1, %v1235_v20, %v1239_v22  ;;  %v119_v10 = vsel %vm117_vm1, %v1239_v22, %v1235_v20  ;;  %v1365_v22 = vld [vmem:[%s1962_s0 + $0x4] sm:$0x3] }
  0x9c   :  { %v135_v23 = vpop.permute.xlu1 %134 }
  0x9d   :  { %v179_v41 = vpop.permute.xlu2 %178 }
  0x9e   :  { %v181_v51 = vsel %vm180_vm0, %v177_v28, %v179_v41  ;;  %v182_v52 = vsel %vm180_vm0, %v179_v41, %v177_v28  ;;  %v127_v41 = vmul.f32 %v123_v39, %v119_v10 }
  0x9f   :  { %v190_v63 = vmul.f32 %v186_v46, %v181_v51  ;;  %v191_v0 = vmul.f32 %v187_v47, %v182_v52  ;;  %v86_v51 = vmul.f32 %v82_v44, %v76_v59  ;;  %v1383_v52 = vld.sshfl [vmem:[#allocation1] sm:$0xff pattern:$0x75316420] }
  0xa1   :  { %v238_v13 = vrot.slane %v190_v63, 4  ;;  %v239_v14 = vrot.slane %v191_v0, 4  ;;  %v102_v0 = vperm.slane %v1365_v22, 0 }
  0xa4   :  { %v137_v30 = vpop.permute.xlu1 %136  ;;  %v156_v31 = vpop.permute.xlu0 %155 }
  0xa5   :  { %v139_v53 = vsel %vm138_vm3, %v135_v23, %v137_v30  ;;  %v140_v54 = vsel %vm138_vm3, %v137_v30, %v135_v23 }
  0xa6   :  { %v148_v2 = vmul.f32 %v144_v45, %v139_v53  ;;  %v149_v3 = vmul.f32 %v145_v50, %v140_v54  ;;  %v1385_v53 = vld.sshfl [vmem:[#allocation1 + $0x8] sm:$0xff pattern:$0x75316420] }
  0xa7   :  { %635 = vst [vmem:[#allocation1] ss:$2 sm:$0xff] %v1244_v25 }
  0xa8   :  { %v232_v16 = vrot.slane %v148_v2, 4  ;;  %v233_v19 = vrot.slane %v149_v3, 4  ;;  %v103_v2 = vperm.slane %v1365_v22, 1 }
  0xaa   :  { %v248_v5 = vsel %vm242_vm6, %v1233_v18, %v233_v19 }
  0xac   :  { %v158_v48 = vpop.permute.xlu1 %157 }
  0xad   :  { %v160_v11 = vsel %vm159_vm4, %v156_v31, %v158_v48  ;;  %v161_v12 = vsel %vm159_vm4, %v158_v48, %v156_v31  ;;  %v128_v48 = vmul.f32 %v124_v40, %v118_v9 }
  0xae   :  { %v169_v24 = vmul.f32 %v165_v55, %v160_v11  ;;  %v170_v28 = vmul.f32 %v166_v56, %v161_v12  ;;  %v93_v11 = vpop.permute.xlu2 %92 }
  0xb0   :  { %v249_v12 = vsel %vm242_vm6, %v169_v24, %v238_v13 }
  0xb4   :  { %v198_v49 = vpop.permute.xlu0 %197  ;;  %v52_v29 = vpop.permute.xlu1 %51 }
  0xb5   :  { %v56_v3 = vsel %vm55_vm5, %v1237_v21, %v52_v29  ;;  %v57_v59 = vsel %vm55_vm5, %v52_v29, %v1237_v21 }
  0xb6   :  { %v64_v21 = vmul.f32 %v60_v4, %v57_v59  ;;  %v257_v59 = vld [vmem:[%s1964_s2] sm:$0xf] }
  0xbc   :  { %v200_v15 = vpop.permute.xlu0 %199 }
  0xbd   :  { %v202_v23 = vsel %vm201_vm7, %v198_v49, %v200_v15  ;;  %v203_v20 = vsel %vm201_vm7, %v200_v15, %v198_v49  ;;  %v85_v49 = vmul.f32 %v81_v42, %v77_v60  ;;  %v247_v60 = vsel %vm242_vm6, %v1231_v17, %v232_v16 }
  0xbe   :  { %v211_v30 = vmul.f32 %v207_v7, %v202_v23  ;;  %v212_v31 = vmul.f32 %v208_v8, %v203_v20  ;;  %v250_v15 = vsel %vm242_vm6, %v170_v28, %v239_v14  ;;  %v216_v20 = vrot.slane %v86_v51, 4 }
  0xbf   :  { %v215_v23 = vrot.slane %v85_v49, 4  ;;  %v65_v17 = vmul.f32 %v1974_v6, %v56_v3  ;;  %v253_v13 = vpack.c.bf16 %v249_v12, %v247_v60  ;;  %v254_v24 = vpack.c.bf16 %v250_v15, %v248_v5  ;;  %v1418_v49 = vld.sshfl [vmem:[#allocation1 + $0x8] sm:$0xff pattern:$0x75316420] }
  0xc0   :  { %v255_v54 = vpack.c.bf16 %v211_v30, %v211_v30  ;;  %v256_v63 = vpack.c.bf16 %v212_v31, %v212_v31  ;;  %v221_v14 = vrot.slane %v127_v41, 4  ;;  %v222_v28 = vrot.slane %v128_v48, 4  ;;  %v1416_v31 = vld.sshfl [vmem:[#allocation1] sm:$0xff pattern:$0x75316420] }
  0xc1   :  { %654 = vst [vmem:[#allocation1] ss:$2 sm:$0xff] %v1244_v25  ;;  %v243_v51 = vsel %vm242_vm6, %v64_v21, %v215_v23  ;;  %v244_v41 = vsel %vm242_vm6, %v65_v17, %v216_v20  ;;  %v262_v23 = vpop.permute.xlu1 %261 }
  0xc2   :  { %v270_v9 = vsel %vm268_vm8, %v255_v54, 0  ;;  %v273_v10 = vsel %vm268_vm8, %v256_v63, 0 }
  0xc3   :  { %280 = vmatpush.bf16.msra.mxu0 %v270_v9  ;;  %293 = vmatpush.bf16.msra.mxu1 %v273_v10 }
  0xc4   :  { %v95_v18 = vpop.permute.xlu0 %94 }
  0xc5   :  { %v97_v16 = vsel %vm96_vm9, %v93_v11, %v95_v18  ;;  %v98_v19 = vsel %vm96_vm9, %v95_v18, %v93_v11 }
  0xc6   :  { %v106_v29 = vmul.f32 %v102_v0, %v98_v19  ;;  %v107_v30 = vmul.f32 %v103_v2, %v97_v16 }
  0xc7   :  { %281 = vmatpush.bf16.msra.mxu0 %v253_v13  ;;  %294 = vmatpush.bf16.msra.mxu1 %v254_v24 }
  0xc8   :  { %v245_v54 = vsel %vm242_vm6, %v106_v29, %v221_v14  ;;  %v246_v48 = vsel %vm242_vm6, %v107_v30, %v222_v28  ;;  %v655_v60 = vld.sshfl [vmem:[#allocation1] sm:$0xff pattern:$0x75316420]  ;;  %v656_v5 = vld.sshfl [vmem:[#allocation1 + $0x8] sm:$0xff pattern:$0x75316420] }
  0xc9   :  { %v251_v63 = vpack.c.bf16 %v245_v54, %v243_v51  ;;  %v252_v3 = vpack.c.bf16 %v246_v48, %v244_v41  ;;  %673 = vst [vmem:[#allocation1] ss:$2 sm:$0xff] %v1244_v25  ;;  %v1146_v29 = vmov 256.0  }
  0xca   :  { %1127 = vrcp.f32 %v1146_v29 }
  0xcb   :  { %282 = vmatpush.bf16.msra.mxu0 %v251_v63  ;;  %295 = vmatpush.bf16.msra.mxu1 %v252_v3 }
  0xce   :  { %1092 = vmatmul.msk.bf16.vlgmr.msra.gmra.mxu0 %vm264_vm10, %v257_v59  ;;  %1093 = vmatmul.msk.bf16.vlgmr.msra.gmra.mxu1 %vm264_vm10, %v257_v59 }
  0xd0   :  { %v674_v9 = vld.sshfl [vmem:[#allocation1] sm:$0xff pattern:$0x75316420]  ;;  %v675_v10 = vld.sshfl [vmem:[#allocation1 + $0x8] sm:$0xff pattern:$0x75316420]  ;;  %v1128_v30 = vpop.eup %1127 }
  0xd1   :  { %692 = vst [vmem:[#allocation1] ss:$2 sm:$0xff] %v1244_v25  ;;  %v307_v51 = vmul.f32 256.0, %v1128_v30  ;;  %vm311_vm11 = vweird.f32 %v1128_v30 }
  0xd3   :  { %v308_v41 = vsub.f32 1.0, %v307_v51 }
  0xd5   :  { %v309_v48 = vmul.f32 %v1128_v30, %v308_v41  ;;  %v1479_v41 = vld [vmem:[%s1962_s0 + $0xa] sm:$0x3] }
  0xd8   :  { %v693_v11 = vld.sshfl [vmem:[#allocation1] sm:$0xff pattern:$0x75316420]  ;;  %v694_v12 = vld.sshfl [vmem:[#allocation1 + $0x8] sm:$0xff pattern:$0x75316420] }
  0xd9   :  { %711 = vst [vmem:[#allocation1] ss:$2 sm:$0xff] %v1244_v25 }
  0xe0   :  { %v712_v15 = vld.sshfl [vmem:[#allocation1] sm:$0xff pattern:$0x75316420]  ;;  %v713_v54 = vld.sshfl [vmem:[#allocation1 + $0x8] sm:$0xff pattern:$0x75316420] }
  0xe1   :  { %716 = vrot.lane.b32.xlu1 %v712_v15, %s1143_s29  ;;  %742 = vst [vmem:[#allocation1] ss:$2 sm:$0xff] %v1244_v25 }
  0xe9   :  { %661 = vrot.lane.b32.xlu1 %v656_v5, %s1140_s26 }
  0xf1   :  { %678 = vrot.lane.b32.xlu1 %v674_v9, %s1141_s27 }
  0xf9   :  { %604 = vrot.lane.b32.xlu1 %v1322_v62, %s1138_s24  ;;  %v310_v62 = vadd.f32 %v1128_v30, %v309_v48  ;;  %v1484_v48 = vld [vmem:[%s1962_s0 + $0xe] sm:$0x3] }
  0xfb   :  { %v1455_v63 = vsel %vm311_vm11, %v1128_v30, %v310_v62 }
 0x14b   :  { %v284_v20 = vpop.f32.mrf.mxu0  ;;  %v297_v21 = vpop.f32.mrf.mxu1 }
 0x14c   :  { %v1435_v17 = vadd.f32 %v284_v20, %v262_v23  ;;  %v1437_v18 = vadd.f32 %v297_v21, %v262_v23 }
 0x14e   :  { %v303_v16 = vadd.f32 %v1437_v18, %v1435_v17  ;;  %v314_v19 = vmul.f32 %v1435_v17, %v1435_v17  ;;  %v315_v13 = vmul.f32 %v1437_v18, %v1437_v18 }
 0x150   :  { %304 = vadd.xlane.f32.xlu2 %v303_v16  ;;  %v316_v24 = vadd.f32 %v315_v13, %v314_v19 }
 0x152   :  { %317 = vadd.xlane.f32.xlu0 %v316_v24 }
 0x153   :  { %v286_v14 = vpop.f32.mrf.mxu0  ;;  %v299_v28 = vpop.f32.mrf.mxu1 }
 0x154   :  { %v1469_v14 = vld [vmem:[%s1966_s5] sm:$0xff]  ;;  %v1472_v29 = vpop.permute.xlu1 %716 }
 0x166   :  { %659 = vrot.lane.b32.xlu0 %v655_v60, %s1140_s26 }
 0x168   :  { %718 = vrot.lane.b32.xlu2 %v713_v54, %s1143_s29  ;;  %v662_v54 = vpop.permute.xlu1 %661 }
 0x16e   :  { %699 = vrot.lane.b32.xlu0 %v694_v12, %s1142_s28 }
 0x170   :  { %697 = vrot.lane.b32.xlu2 %v693_v11, %s1142_s28 }
 0x176   :  { %602 = vrot.lane.b32.xlu0 %v1320_v61, %s1138_s24 }
 0x178   :  { %680 = vrot.lane.b32.xlu2 %v675_v10, %s1141_s27  ;;  %v1463_v10 = vld [vmem:[%s1965_s4] sm:$0xff] }
 0x1c3   :  { %v305_v61 = vpop.xlane.xlu2 %304 }
 0x1c4   :  { %v313_v3 = vmul.f32 %v1455_v63, %v305_v61  ;;  %v1976_v61 = vperm.slane %v1479_v41, 0 }
 0x1c5   :  { %v318_v59 = vpop.xlane.xlu0 %317 }
 0x1c6   :  { %v320_v60 = vmul.f32 %v313_v3, %v313_v3  ;;  %v319_v5 = vmul.f32 %v318_v59, %v1455_v63 }
 0x1c8   :  { %v321_v9 = vsub.f32 %v319_v5, %v320_v60 }
 0x1ca   :  { %v322_v12 = vadd.f32 1e-05, %v321_v9  ;;  %v705_v9 = vperm.slane %v1484_v48, 0 }
 0x1cb   :  { %v1474_v51 = vpop.permute.xlu2 %718 }
 0x1cc   :  { %1129 = vrsqrt.f32 %v322_v12  ;;  %vm329_vm13 = vweird.f32 %v322_v12 }
 0x1d2   :  { %v1130_v15 = vpop.eup %1129 }
 0x1d3   :  { %v324_v23 = vmul.f32 %v1130_v15, %v322_v12  ;;  %vm330_vm12 = vweird.f32 %v1130_v15  ;;  %v698_v59 = vpop.permute.xlu2 %697  ;;  %v706_v12 = vperm.slane %v1484_v48, 1  ;;  %v1979_v48 = vperm.slane %v1479_v41, 1 }
 0x1d4   :  { %vm331_vm14 = vmor %vm329_vm13, %vm330_vm12  ;;  %vm437_vm12 = vcmask 588800  }
 0x1d5   :  { %v325_v20 = vmul.f32 %v1130_v15, %v324_v23 }
 0x1d7   :  { %v326_v11 = vmul.f32 0.5, %v325_v20  ;;  %v1501_v20 = vld [vmem:[%s1962_s0 + $0xc] sm:$0x3] }
 0x1d8   :  { %v660_v30 = vpop.permute.xlu0 %659 }
 0x1d9   :  { %v327_v21 = vsub.f32 1.5, %v326_v11  ;;  %v663_v60 = vsel %vm138_vm3, %v660_v30, %v662_v54  ;;  %v664_v5 = vsel %vm138_vm3, %v662_v54, %v660_v30 }
 0x1da   :  { %v671_v11 = vmul.f32 %v1976_v61, %v663_v60  ;;  %v744_v61 = vld.sshfl [vmem:[#allocation1 + $0x8] sm:$0xff pattern:$0x75316420] }
 0x1db   :  { %v328_v16 = vmul.f32 %v1130_v15, %v327_v21 }
 0x1dc   :  { %v749_v30 = vrot.slane %v671_v11, 4 }
 0x1dd   :  { %v332_v19 = vsel %vm331_vm14, %v1130_v15, %v328_v16 }
 0x1de   :  { %v333_v13 = vmul.f32 %v332_v19, %v1463_v10 }
 0x1e0   :  { %336 = vperm.xlu1 %1124, %v333_v13   ;;  %v341_v24 = vmul.f32 %v333_v13, %v313_v3  ;;  %v700_v62 = vpop.permute.xlu0 %699  ;;  %v1975_v3 = vperm.slane %v1479_v41, 1  ;;  %v679_v13 = vpop.permute.xlu1 %678 }
 0x1e1   :  { %v701_v15 = vsel %vm180_vm0, %v698_v59, %v700_v62  ;;  %v702_v23 = vsel %vm180_vm0, %v700_v62, %v698_v59  ;;  %v681_v62 = vpop.permute.xlu2 %680 }
 0x1e2   :  { %v342_v28 = vsub.f32 %v1469_v14, %v341_v24  ;;  %v672_v21 = vmul.f32 %v1975_v3, %v664_v5  ;;  %v709_v16 = vmul.f32 %v705_v9, %v701_v15  ;;  %v710_v19 = vmul.f32 %v706_v12, %v702_v23  ;;  %v743_v3 = vld.sshfl [vmem:[#allocation1] sm:$0xff pattern:$0x75316420] }
 0x1e3   :  { %v686_v24 = vperm.slane %v1501_v20, 0  ;;  %v682_v60 = vsel %vm159_vm4, %v679_v13, %v681_v62  ;;  %v683_v5 = vsel %vm159_vm4, %v681_v62, %v679_v13  ;;  %v1522_v11 = vsel %vm242_vm6, %v743_v3, %v749_v30  ;;  %1022 = vst [vmem:[#allocation1] ss:$2 sm:$0xff] %v1244_v25 }
 0x1e4   :  { %v750_v54 = vrot.slane %v672_v21, 4  ;;  %v755_v59 = vrot.slane %v709_v16, 4  ;;  %v756_v6 = vrot.slane %v710_v19, 4 }
 0x1e5   :  { %v690_v15 = vmul.f32 %v686_v24, %v682_v60 }
 0x1e6   :  { %v1528_v16 = vsel %vm242_vm6, %v744_v61, %v750_v54 }
 0x1e7   :  { %v1525_v21 = vsel %vm242_vm6, %v690_v15, %v755_v59 }
 0x1e8   :  { %345 = vperm.xlu1 %1124, %v342_v28   ;;  %v687_v28 = vperm.slane %v1501_v20, 1  ;;  %v769_v13 = vpack.c.bf16 %v1525_v21, %v1522_v11  ;;  %v1538_v60 = vpop.permute.xlu1 %604 }
 0x1ea   :  { %v691_v23 = vmul.f32 %v687_v28, %v683_v5 }
 0x1ec   :  { %v1531_v19 = vsel %vm242_vm6, %v691_v23, %v756_v6 }
 0x1ed   :  { %v770_v62 = vpack.c.bf16 %v1531_v19, %v1528_v16 }
 0x252   :  { %v337_v3 = vpop.permute.xlu1 %336 }
 0x253   :  { %v339_v30 = vmul.f32 %v337_v3, %v1435_v17  ;;  %v340_v59 = vmul.f32 %v337_v3, %v1437_v18 }
 0x25a   :  { %v346_v61 = vpop.permute.xlu1 %345 }
 0x25b   :  { %v348_v54 = vadd.f32 %v346_v61, %v339_v30  ;;  %v349_v5 = vadd.f32 %v346_v61, %v340_v59 }
 0x25d   :  { %vm350_vm15 = vcmp.gt.f32.partialorder %v348_v54, 0.0  ;;  %vm351_vm11 = vcmp.gt.f32.partialorder %v349_v5, 0.0  ;;  %v352_v6 = vmul.f32 0.01, %v348_v54  ;;  %v353_v25 = vmul.f32 0.01, %v349_v5 }
 0x25f   :  { %v1542_v15 = vsel %vm350_vm15, %v348_v54, %v352_v6  ;;  %v1544_v23 = vsel %vm351_vm11, %v349_v5, %v353_v25 }
 0x260   :  { %406 = vrot.lane.b32.xlu0 %v1544_v23, %s1142_s28  ;;  %398 = vrot.lane.b32.xlu2 %v1544_v23, %s1141_s27 }
 0x261   :  { %412 = vrot.lane.b32.xlu1 %v1542_v15, %s1143_s29 }
 0x268   :  { %374 = vrot.lane.b32.xlu0 %v1544_v23, %s1144_s30  ;;  %372 = vrot.lane.b32.xlu2 %v1542_v15, %s1144_s30 }
 0x269   :  { %414 = vrot.lane.b32.xlu1 %v1544_v23, %s1143_s29 }
 0x270   :  { %356 = vrot.lane.b32.xlu0 %v1542_v15, %s1137_s23  ;;  %382 = vrot.lane.b32.xlu2 %v1544_v23, %s1139_s25 }
 0x271   :  { %396 = vrot.lane.b32.xlu1 %v1542_v15, %s1141_s27 }
 0x278   :  { %366 = vrot.lane.b32.xlu0 %v1544_v23, %s1138_s24  ;;  %364 = vrot.lane.b32.xlu2 %v1542_v15, %s1138_s24 }
 0x279   :  { %404 = vrot.lane.b32.xlu1 %v1542_v15, %s1142_s28 }
 0x280   :  { %642 = vrot.lane.b32.xlu0 %v1418_v49, %s1139_s25  ;;  %640 = vrot.lane.b32.xlu2 %v1416_v31, %s1139_s25 }
 0x281   :  { %388 = vrot.lane.b32.xlu1 %v1542_v15, %s1140_s26 }
 0x288   :  { %621 = vrot.lane.b32.xlu0 %v1383_v52, %s1144_s30  ;;  %585 = vrot.lane.b32.xlu2 %v1260_v35, %s1137_s23 }
 0x289   :  { %390 = vrot.lane.b32.xlu1 %v1544_v23, %s1140_s26 }
 0x290   :  { %777 = vperm.xlu2 %1125, %v1333_v1  }
 0x291   :  { %380 = vrot.lane.b32.xlu1 %v1542_v15, %s1139_s25 }
 0x299   :  { %358 = vrot.lane.b32.xlu1 %v1544_v23, %s1137_s23 }
 0x2a1   :  { %583 = vrot.lane.b32.xlu1 %v1258_v34, %s1137_s23  ;;  %v1599_v34 = vpop.permute.xlu0 %602 }
 0x2a9   :  { %623 = vrot.lane.b32.xlu1 %v1385_v53, %s1144_s30 }
 0x2ba   :  { %v399_v61 = vpop.permute.xlu2 %398 }
 0x2d2   :  { %v407_v54 = vpop.permute.xlu0 %406 }
 0x2d3   :  { %v413_v52 = vpop.permute.xlu1 %412 }
 0x2db   :  { %v415_v31 = vpop.permute.xlu1 %414 }
 0x2dc   :  { %v416_v35 = vsel %vm201_vm7, %v413_v52, %v415_v31  ;;  %v417_v1 = vsel %vm201_vm7, %v415_v31, %v413_v52 }
 0x2dd   :  { %v418_v49 = vmul.f32 %v416_v35, %v207_v7  ;;  %v419_v17 = vmul.f32 %v417_v1, %v208_v8  ;;  %v373_v1 = vpop.permute.xlu2 %372 }
 0x2df   :  { %v428_v18 = vpack.c.bf16 %v418_v49, %v418_v49  ;;  %v429_v3 = vpack.c.bf16 %v419_v17, %v419_v17 }
 0x2e1   :  { %v442_v53 = vsel %vm242_vm6, %v428_v18, 0  ;;  %v445_v30 = vsel %vm242_vm6, %v429_v3, 0  ;;  %v375_v18 = vpop.permute.xlu0 %374 }
 0x2e2   :  { %450 = vmatpush.bf16.msra.mxu2 %v442_v53  ;;  %463 = vmatpush.bf16.msra.mxu3 %v445_v30 }
 0x2e3   :  { %v397_v59 = vpop.permute.xlu1 %396 }
 0x2e4   :  { %v400_v5 = vsel %vm159_vm4, %v397_v59, %v399_v61  ;;  %v401_v58 = vsel %vm159_vm4, %v399_v61, %v397_v59  ;;  %v1632_v61 = vld [vmem:[%s1962_s0 + $0x10] sm:$0x3] }
 0x2e5   :  { %v402_v25 = vmul.f32 %v400_v5, %v165_v55  ;;  %v403_v52 = vmul.f32 %v401_v58, %v166_v56  ;;  %v383_v53 = vpop.permute.xlu2 %382  ;;  %v724_v37 = vperm.slane %v1632_v61, 0  ;;  %v721_v58 = vsel %vm201_vm7, %v1474_v51, %v1472_v29 }
 0x2e9   :  { %v357_v56 = vpop.permute.xlu0 %356 }
 0x2eb   :  { %v405_v7 = vpop.permute.xlu1 %404 }
 0x2ec   :  { %v408_v8 = vsel %vm180_vm0, %v405_v7, %v407_v54  ;;  %v409_v6 = vsel %vm180_vm0, %v407_v54, %v405_v7  ;;  %v376_v54 = vsel %vm96_vm9, %v373_v1, %v375_v18 }
 0x2ed   :  { %v410_v31 = vmul.f32 %v408_v8, %v186_v46  ;;  %v411_v35 = vmul.f32 %v409_v6, %v187_v47 }
 0x2ef   :  { %v426_v49 = vpack.c.bf16 %v410_v31, %v402_v25  ;;  %v427_v17 = vpack.c.bf16 %v411_v35, %v403_v52  ;;  %v379_v25 = vmul.f32 %v376_v54, %v103_v2 }
 0x2f1   :  { %451 = vmatpush.bf16.msra.mxu2 %v426_v49  ;;  %464 = vmatpush.bf16.msra.mxu3 %v427_v17  ;;  %v367_v35 = vpop.permute.xlu0 %366 }
 0x2f3   :  { %v389_v3 = vpop.permute.xlu1 %388 }
 0x2fb   :  { %v391_v30 = vpop.permute.xlu1 %390 }
 0x2fc   :  { %v392_v55 = vsel %vm138_vm3, %v389_v3, %v391_v30  ;;  %v393_v43 = vsel %vm138_vm3, %v391_v30, %v389_v3 }
 0x2fd   :  { %v394_v38 = vmul.f32 %v392_v55, %v144_v45  ;;  %v395_v46 = vmul.f32 %v393_v43, %v145_v50  ;;  %v377_v45 = vsel %vm96_vm9, %v375_v18, %v373_v1  ;;  %v725_v50 = vperm.slane %v1632_v61, 1 }
 0x2fe   :  { %v378_v6 = vmul.f32 %v377_v45, %v102_v0  ;;  %v1977_v55 = vperm.slane %v1309_v57, 1  ;;  %v1693_v57 = vld [vmem:[%s1962_s0 + $0x6] sm:$0x3]  ;;  %v1700_v45 = vld [vmem:[%s1962_s0] sm:$0x3] }
 0x2ff   :  { %v424_v47 = vpack.c.bf16 %v394_v38, %v1542_v15  ;;  %v425_v59 = vpack.c.bf16 %v395_v46, %v1544_v23  ;;  %v365_v15 = vpop.permute.xlu2 %364  ;;  %v720_v23 = vsel %vm201_vm7, %v1472_v29, %v1474_v51  ;;  %v729_v49 = vmul.f32 %v725_v50, %v721_v58 }
 0x300   :  { %v728_v1 = vmul.f32 %v724_v37, %v720_v23  ;;  %v368_v22 = vsel %vm75_vm2, %v365_v15, %v367_v35  ;;  %v648_v23 = vperm.slane %v1693_v57, 0  ;;  %v649_v58 = vperm.slane %v1693_v57, 1 }
 0x301   :  { %452 = vmatpush.bf16.msra.mxu2 %v424_v47  ;;  %465 = vmatpush.bf16.msra.mxu3 %v425_v59  ;;  %v772_v18 = vpack.c.bf16 %v729_v49, %v729_v49  ;;  %v643_v47 = vpop.permute.xlu0 %642 }
 0x302   :  { %v771_v17 = vpack.c.bf16 %v728_v1, %v728_v1 }
 0x303   :  { %v381_v5 = vpop.permute.xlu1 %380  ;;  %v787_v36 = vsel %vm268_vm8, %v772_v18, 0 }
 0x304   :  { %v384_v7 = vsel %vm117_vm1, %v381_v5, %v383_v53  ;;  %v385_v8 = vsel %vm117_vm1, %v383_v53, %v381_v5  ;;  %v371_v53 = vmul.f32 %v368_v22, %v82_v44  ;;  %v430_v44 = vld [vmem:[%s1967_s6] sm:$0xf]  ;;  %v607_v5 = vsel %vm75_vm2, %v1538_v60, %v1599_v34 }
 0x305   :  { %v386_v52 = vmul.f32 %v385_v8, %v123_v39  ;;  %v387_v31 = vmul.f32 %v384_v7, %v124_v40  ;;  %v369_v39 = vsel %vm75_vm2, %v367_v35, %v365_v15  ;;  %v606_v15 = vsel %vm75_vm2, %v1599_v34, %v1538_v60  ;;  %v1727_v60 = vld [vmem:[%s1962_s0 + $0x4] sm:$0x3] }
 0x306   :  { %v370_v3 = vmul.f32 %v369_v39, %v81_v42  ;;  %v784_v42 = vsel %vm268_vm8, %v771_v17, 0  ;;  %v591_v34 = vperm.slane %v1700_v45, 0  ;;  %v630_v35 = vperm.slane %v1727_v60, 1 }
 0x307   :  { %v422_v29 = vpack.c.bf16 %v386_v52, %v378_v6  ;;  %v423_v51 = vpack.c.bf16 %v387_v31, %v379_v25  ;;  %v641_v33 = vpop.permute.xlu2 %640  ;;  %v592_v25 = vperm.slane %v1700_v45, 1  ;;  %v629_v31 = vperm.slane %v1727_v60, 0 }
 0x308   :  { %v644_v8 = vsel %vm117_vm1, %v641_v33, %v643_v47  ;;  %v645_v6 = vsel %vm117_vm1, %v643_v47, %v641_v33 }
 0x309   :  { %453 = vmatpush.bf16.msra.mxu2 %v422_v29  ;;  %466 = vmatpush.bf16.msra.mxu3 %v423_v51  ;;  %v652_v19 = vmul.f32 %v648_v23, %v645_v6 }
 0x30b   :  { %v359_v0 = vpop.permute.xlu1 %358  ;;  %v738_v33 = vrot.slane %v652_v19, 4 }
 0x30c   :  { %v360_v40 = vsel %vm55_vm5, %v357_v56, %v359_v0  ;;  %v361_v2 = vsel %vm55_vm5, %v359_v0, %v357_v56  ;;  %v1683_v56 = vld [vmem:[%s1962_s0 + $0x2] sm:$0x3] }
 0x30d   :  { %v362_v30 = vmul.f32 %v361_v2, %v60_v4  ;;  %v363_v43 = vmul.f32 %v360_v40, %v1977_v55  ;;  %v610_v59 = vperm.slane %v1683_v56, 0  ;;  %v611_v54 = vperm.slane %v1683_v56, 1 }
 0x30f   :  { %v420_v38 = vpack.c.bf16 %v370_v3, %v362_v30  ;;  %v421_v46 = vpack.c.bf16 %v371_v53, %v363_v43  ;;  %v586_v7 = vpop.permute.xlu2 %585  ;;  %v614_v52 = vmul.f32 %v610_v59, %v607_v5  ;;  %v615_v11 = vmul.f32 %v611_v54, %v606_v15 }
 0x311   :  { %454 = vmatpush.bf16.msra.mxu2 %v420_v38  ;;  %467 = vmatpush.bf16.msra.mxu3 %v421_v46  ;;  %v732_v49 = vrot.slane %v614_v52, 4  ;;  %v733_v22 = vrot.slane %v615_v11, 4  ;;  %v773_v38 = vld [vmem:[%s1964_s2] sm:$0xf] }
 0x313   :  { %v584_v4 = vpop.permute.xlu1 %583 }
 0x314   :  { %1094 = vmatmul.msk.bf16.vlgmr.msra.gmra.mxu2 %vm437_vm12, %v430_v44  ;;  %1095 = vmatmul.msk.bf16.vlgmr.msra.gmra.mxu3 %vm437_vm12, %v430_v44  ;;  %v587_v21 = vsel %vm55_vm5, %v584_v4, %v586_v7  ;;  %v588_v16 = vsel %vm55_vm5, %v586_v7, %v584_v4 }
 0x315   :  { %794 = vmatpush.bf16.msrb.mxu2 %v784_v42  ;;  %807 = vmatpush.bf16.msrb.mxu3 %v787_v36  ;;  %v595_v29 = vmul.f32 %v591_v34, %v588_v16  ;;  %v596_v51 = vmul.f32 %v592_v25, %v587_v21 }
 0x317   :  { %v759_v18 = vsel %vm242_vm6, %v595_v29, %v732_v49  ;;  %v760_v53 = vsel %vm242_vm6, %v596_v51, %v733_v22  ;;  %v778_v44 = vpop.permute.xlu2 %777 }
 0x319   :  { %795 = vmatpush.bf16.msrb.mxu2 %v769_v13  ;;  %808 = vmatpush.bf16.msrb.mxu3 %v770_v62  ;;  %v653_v13 = vmul.f32 %v649_v58, %v644_v8  ;;  %v622_v62 = vpop.permute.xlu0 %621 }
 0x31b   :  { %v624_v1 = vpop.permute.xlu1 %623  ;;  %v739_v40 = vrot.slane %v653_v13, 4 }
 0x31c   :  { %v625_v39 = vsel %vm96_vm9, %v622_v62, %v624_v1  ;;  %v626_v0 = vsel %vm96_vm9, %v624_v1, %v622_v62 }
 0x31d   :  { %v633_v2 = vmul.f32 %v629_v31, %v626_v0  ;;  %v634_v17 = vmul.f32 %v630_v35, %v625_v39 }
 0x31f   :  { %v761_v3 = vsel %vm242_vm6, %v633_v2, %v738_v33  ;;  %v762_v30 = vsel %vm242_vm6, %v634_v17, %v739_v40 }
 0x320   :  { %v767_v55 = vpack.c.bf16 %v761_v3, %v759_v18  ;;  %v768_v43 = vpack.c.bf16 %v762_v30, %v760_v53 }
 0x322   :  { %796 = vmatpush.bf16.msrb.mxu2 %v767_v55  ;;  %809 = vmatpush.bf16.msrb.mxu3 %v768_v43 }
 0x325   :  { %1106 = vmatmul.msk.bf16.vlgmr.msrb.gmra.mxu2 %vm264_vm10, %v773_v38  ;;  %1107 = vmatmul.msk.bf16.vlgmr.msrb.gmra.mxu3 %vm264_vm10, %v773_v38 }
 0x397   :  { %v1766_v46 = vpop.f32.mrf.mxu2  ;;  %v1768_v47 = vpop.f32.mrf.mxu3 }
 0x39f   :  { %v458_v42 = vpop.f32.mrf.mxu2  ;;  %v471_v36 = vpop.f32.mrf.mxu3 }
 0x3a8   :  { %v798_v4 = vpop.f32.mrf.mxu2  ;;  %v811_v15 = vpop.f32.mrf.mxu3 }
 0x3a9   :  { %v799_v5 = vadd.f32 %v798_v4, %v778_v44  ;;  %v812_v7 = vadd.f32 %v811_v15, %v778_v44 }
 0x3ab   :  { %v817_v8 = vadd.f32 %v812_v7, %v799_v5  ;;  %v821_v6 = vmul.f32 %v799_v5, %v799_v5  ;;  %v822_v52 = vmul.f32 %v812_v7, %v812_v7 }
 0x3ad   :  { %818 = vadd.xlane.f32.xlu0 %v817_v8  ;;  %v823_v11 = vadd.f32 %v822_v52, %v821_v6 }
 0x3af   :  { %824 = vadd.xlane.f32.xlu1 %v823_v11 }
 0x3b0   :  { %v800_v21 = vpop.f32.mrf.mxu2  ;;  %v813_v16 = vpop.f32.mrf.mxu3 }
 0x420   :  { %v819_v19 = vpop.xlane.xlu0 %818 }
 0x421   :  { %v820_v13 = vmul.f32 %v819_v19, %v1455_v63 }
 0x422   :  { %v825_v62 = vpop.xlane.xlu1 %824 }
 0x423   :  { %v827_v29 = vmul.f32 %v820_v13, %v820_v13  ;;  %v826_v51 = vmul.f32 %v825_v62, %v1455_v63 }
 0x425   :  { %v828_v1 = vsub.f32 %v826_v51, %v827_v29 }
 0x427   :  { %v829_v49 = vadd.f32 1e-05, %v828_v1  ;;  %v515_v1 = vld [vmem:[%s1969_s10] sm:$0xf] }
 0x429   :  { %1131 = vrsqrt.f32 %v829_v49  ;;  %vm836_vm13 = vweird.f32 %v829_v49 }
 0x42f   :  { %v1132_v22 = vpop.eup %1131 }
 0x430   :  { %v831_v39 = vmul.f32 %v1132_v22, %v829_v49  ;;  %vm837_vm10 = vweird.f32 %v1132_v22 }
 0x431   :  { %vm838_vm14 = vmor %vm836_vm13, %vm837_vm10 }
 0x432   :  { %v832_v0 = vmul.f32 %v1132_v22, %v831_v39 }
 0x434   :  { %v833_v33 = vmul.f32 0.5, %v832_v0 }
 0x436   :  { %v834_v40 = vsub.f32 1.5, %v833_v33 }
 0x438   :  { %v835_v2 = vmul.f32 %v1132_v22, %v834_v40 }
 0x43a   :  { %v839_v17 = vsel %vm838_vm14, %v1132_v22, %v835_v2 }
 0x43b   :  { %v840_v18 = vmul.f32 %v839_v17, %v1463_v10  ;;  %v431_v10 = vld [vmem:[%s1968_s7] sm:$0xff] }
 0x43d   :  { %843 = vperm.xlu2 %1125, %v840_v18   ;;  %v848_v3 = vmul.f32 %v840_v18, %v820_v13 }
 0x43f   :  { %v849_v53 = vsub.f32 %v1469_v14, %v848_v3  ;;  %v521_v14 = vpack.c.bf16 %v1246_v26, %v1246_v26 }
 0x445   :  { %852 = vperm.xlu2 %1125, %v849_v53  }
 0x497   :  { %v844_v30 = vpop.permute.xlu2 %843 }
 0x498   :  { %v846_v55 = vmul.f32 %v844_v30, %v799_v5  ;;  %v847_v43 = vmul.f32 %v844_v30, %v812_v7  ;;  %v522_v5 = vpack.c.bf16 %v1248_v27, %v1248_v27  ;;  %v534_v7 = vsel %vm268_vm8, %v521_v14, 0 }
 0x499   :  { %546 = vmatpush.bf16.msrb.mxu0 %v534_v7 }
 0x49a   :  { %v537_v6 = vsel %vm268_vm8, %v522_v5, 0 }
 0x49b   :  { %559 = vmatpush.bf16.msrb.mxu1 %v537_v6 }
 0x49f   :  { %v853_v38 = vpop.permute.xlu2 %852 }
 0x4a0   :  { %v855_v42 = vadd.f32 %v853_v38, %v846_v55  ;;  %v856_v36 = vadd.f32 %v853_v38, %v847_v43 }
 0x4a2   :  { %vm857_vm15 = vcmp.gt.f32.partialorder %v855_v42, 0.0  ;;  %vm858_vm11 = vcmp.gt.f32.partialorder %v856_v36, 0.0  ;;  %v859_v44 = vmul.f32 0.01, %v855_v42  ;;  %v860_v4 = vmul.f32 0.01, %v856_v36 }
 0x4a4   :  { %v1774_v15 = vsel %vm857_vm15, %v855_v42, %v859_v44  ;;  %v1776_v8 = vsel %vm858_vm11, %v856_v36, %v860_v4 }
 0x4a5   :  { %913 = vrot.lane.b32.xlu1 %v1776_v8, %s1142_s28  ;;  %905 = vrot.lane.b32.xlu0 %v1776_v8, %s1141_s27 }
 0x4a6   :  { %919 = vrot.lane.b32.xlu2 %v1774_v15, %s1143_s29 }
 0x4ad   :  { %887 = vrot.lane.b32.xlu1 %v1774_v15, %s1139_s25  ;;  %879 = vrot.lane.b32.xlu0 %v1774_v15, %s1144_s30 }
 0x4ae   :  { %921 = vrot.lane.b32.xlu2 %v1776_v8, %s1143_s29 }
 0x4b5   :  { %865 = vrot.lane.b32.xlu1 %v1776_v8, %s1137_s23  ;;  %889 = vrot.lane.b32.xlu0 %v1776_v8, %s1139_s25 }
 0x4b6   :  { %903 = vrot.lane.b32.xlu2 %v1774_v15, %s1141_s27 }
 0x4bd   :  { %434 = vperm.xlu1 %1124, %v431_v10   ;;  %871 = vrot.lane.b32.xlu0 %v1774_v15, %s1138_s24 }
 0x4be   :  { %911 = vrot.lane.b32.xlu2 %v1774_v15, %s1142_s28 }
 0x4c5   :  { %941 = vperm.xlu0 %1126, %v431_v10  }
 0x4c6   :  { %895 = vrot.lane.b32.xlu2 %v1774_v15, %s1140_s26 }
 0x4ce   :  { %897 = vrot.lane.b32.xlu2 %v1776_v8, %s1140_s26 }
 0x4d6   :  { %881 = vrot.lane.b32.xlu2 %v1776_v8, %s1144_s30 }
 0x4de   :  { %863 = vrot.lane.b32.xlu2 %v1774_v15, %s1137_s23 }
 0x4e6   :  { %873 = vrot.lane.b32.xlu2 %v1776_v8, %s1138_s24 }
 0x500   :  { %v920_v52 = vpop.permute.xlu2 %919 }
 0x508   :  { %v922_v11 = vpop.permute.xlu2 %921 }
 0x509   :  { %v923_v21 = vsel %vm201_vm7, %v920_v52, %v922_v11  ;;  %v924_v16 = vsel %vm201_vm7, %v922_v11, %v920_v52  ;;  %vm529_vm7 = vcmask 31744  }
 0x50a   :  { %v925_v26 = vmul.f32 %v923_v21, %v724_v37  ;;  %v926_v27 = vmul.f32 %v924_v16, %v725_v50  ;;  %1096 = vmatmul.msk.bf16.vlgmr.msrb.gmra.mxu0 %vm529_vm7, %v515_v1  ;;  %1097 = vmatmul.msk.bf16.vlgmr.msrb.gmra.mxu1 %vm529_vm7, %v515_v1 }
 0x50c   :  { %v935_v19 = vpack.c.bf16 %v925_v26, %v925_v26  ;;  %v936_v13 = vpack.c.bf16 %v926_v27, %v926_v27 }
 0x50e   :  { %v948_v62 = vsel %vm242_vm6, %v935_v19, 0  ;;  %v951_v29 = vsel %vm242_vm6, %v936_v13, 0 }
 0x50f   :  { %956 = vmatpush.bf16.msra.mxu0 %v948_v62  ;;  %969 = vmatpush.bf16.msra.mxu1 %v951_v29 }
 0x510   :  { %v904_v51 = vpop.permute.xlu2 %903 }
 0x517   :  { %v914_v61 = vpop.permute.xlu1 %913  ;;  %v906_v37 = vpop.permute.xlu0 %905 }
 0x518   :  { %v907_v50 = vsel %vm159_vm4, %v904_v51, %v906_v37  ;;  %v908_v49 = vsel %vm159_vm4, %v906_v37, %v904_v51  ;;  %v912_v22 = vpop.permute.xlu2 %911 }
 0x519   :  { %v909_v39 = vmul.f32 %v907_v50, %v686_v24  ;;  %v910_v0 = vmul.f32 %v908_v49, %v687_v28  ;;  %v915_v33 = vsel %vm180_vm0, %v912_v22, %v914_v61  ;;  %v916_v40 = vsel %vm180_vm0, %v914_v61, %v912_v22  ;;  %v937_v50 = vld [vmem:[%s1967_s6] sm:$0xf] }
 0x51a   :  { %v917_v2 = vmul.f32 %v915_v33, %v705_v9  ;;  %v918_v17 = vmul.f32 %v916_v40, %v706_v12  ;;  %v1978_v9 = vperm.slane %v1479_v41, 0  ;;  %v1021_v40 = vld [vmem:[%s1969_s10] sm:$0xf] }
 0x51c   :  { %v933_v18 = vpack.c.bf16 %v917_v2, %v909_v39  ;;  %v934_v3 = vpack.c.bf16 %v918_v17, %v910_v0 }
 0x51e   :  { %957 = vmatpush.bf16.msra.mxu0 %v933_v18  ;;  %970 = vmatpush.bf16.msra.mxu1 %v934_v3 }
 0x51f   :  { %v888_v24 = vpop.permute.xlu1 %887  ;;  %v880_v20 = vpop.permute.xlu0 %879 }
 0x520   :  { %v896_v53 = vpop.permute.xlu2 %895 }
 0x527   :  { %v866_v28 = vpop.permute.xlu1 %865  ;;  %v890_v42 = vpop.permute.xlu0 %889 }
 0x528   :  { %v898_v30 = vpop.permute.xlu2 %897  ;;  %v891_v4 = vsel %vm117_vm1, %v888_v24, %v890_v42  ;;  %v892_v10 = vsel %vm117_vm1, %v890_v42, %v888_v24 }
 0x529   :  { %v899_v55 = vsel %vm138_vm3, %v896_v53, %v898_v30  ;;  %v900_v43 = vsel %vm138_vm3, %v898_v30, %v896_v53 }
 0x52a   :  { %v901_v38 = vmul.f32 %v899_v55, %v1978_v9  ;;  %v902_v12 = vmul.f32 %v900_v43, %v1979_v48 }
 0x52c   :  { %v931_v36 = vpack.c.bf16 %v901_v38, %v1774_v15  ;;  %v932_v44 = vpack.c.bf16 %v902_v12, %v1776_v8  ;;  %v893_v15 = vmul.f32 %v892_v10, %v648_v23  ;;  %v894_v8 = vmul.f32 %v891_v4, %v649_v58 }
 0x52e   :  { %958 = vmatpush.bf16.msra.mxu0 %v931_v36  ;;  %971 = vmatpush.bf16.msra.mxu1 %v932_v44 }
 0x52f   :  { %v435_v14 = vpop.permute.xlu1 %434  ;;  %v872_v26 = vpop.permute.xlu0 %871 }
 0x530   :  { %v1865_v5 = vadd.f32 %v1766_v46, %v435_v14  ;;  %v1868_v41 = vadd.f32 %v1768_v47, %v435_v14  ;;  %v882_v7 = vpop.permute.xlu2 %881 }
 0x531   :  { %v883_v6 = vsel %vm96_vm9, %v880_v20, %v882_v7  ;;  %v884_v52 = vsel %vm96_vm9, %v882_v7, %v880_v20 }
 0x532   :  { %v885_v46 = vmul.f32 %v884_v52, %v629_v31  ;;  %v886_v47 = vmul.f32 %v883_v6, %v630_v35  ;;  %v475_v11 = vadd.f32 %v1868_v41, %v1865_v5  ;;  %v479_v23 = vmul.f32 %v1865_v5, %v1865_v5 }
 0x533   :  { %v480_v57 = vmul.f32 %v1868_v41, %v1868_v41 }
 0x534   :  { %476 = vadd.xlane.f32.xlu2 %v475_v11  ;;  %v929_v58 = vpack.c.bf16 %v893_v15, %v885_v46  ;;  %v930_v21 = vpack.c.bf16 %v894_v8, %v886_v47  ;;  %v473_v15 = vld [vmem:[%s1970_s8] sm:$0xff] }
 0x535   :  { %v481_v16 = vadd.f32 %v480_v57, %v479_v23  ;;  %v474_v46 = vld [vmem:[%s1971_s9] sm:$0xff] }
 0x536   :  { %959 = vmatpush.bf16.msra.mxu0 %v929_v58  ;;  %972 = vmatpush.bf16.msra.mxu1 %v930_v21  ;;  %v523_v11 = vld [vmem:[%s1972_s11] sm:$0xff] }
 0x537   :  { %482 = vadd.xlane.f32.xlu0 %v481_v16  ;;  %v942_v56 = vpop.permute.xlu0 %941 }
 0x538   :  { %v864_v31 = vpop.permute.xlu2 %863 }
 0x539   :  { %v867_v60 = vsel %vm55_vm5, %v864_v31, %v866_v28  ;;  %v868_v35 = vsel %vm55_vm5, %v866_v28, %v864_v31 }
 0x53a   :  { %v869_v62 = vmul.f32 %v868_v35, %v591_v34  ;;  %v870_v29 = vmul.f32 %v867_v60, %v592_v25  ;;  %v1024_v25 = vld.sshfl [vmem:[#allocation1 + $0x8] sm:$0xff pattern:$0x75316420] }
 0x53b   :  { %v1028_v22 = vpack.c.bf16 %v1024_v25, %v1024_v25 }
 0x53d   :  { %v1042_v33 = vsel %vm268_vm8, %v1028_v22, 0 }
 0x53e   :  { %1064 = vmatpush.bf16.msra.mxu3 %v1042_v33 }
 0x540   :  { %v874_v27 = vpop.permute.xlu2 %873 }
 0x541   :  { %v875_v19 = vsel %vm75_vm2, %v872_v26, %v874_v27  ;;  %v876_v13 = vsel %vm75_vm2, %v874_v27, %v872_v26  ;;  %1111 = vmatmul.msk.bf16.vlgmr.msra.gmra.mxu3 %vm529_vm7, %v1021_v40 }
 0x542   :  { %v877_v51 = vmul.f32 %v876_v13, %v610_v59  ;;  %v878_v1 = vmul.f32 %v875_v19, %v611_v54  ;;  %v1023_v54 = vld.sshfl [vmem:[#allocation1] sm:$0xff pattern:$0x75316420] }
 0x543   :  { %v1027_v49 = vpack.c.bf16 %v1023_v54, %v1023_v54 }
 0x544   :  { %v927_v61 = vpack.c.bf16 %v877_v51, %v869_v62  ;;  %v928_v37 = vpack.c.bf16 %v878_v1, %v870_v29 }
 0x545   :  { %v1039_v0 = vsel %vm268_vm8, %v1027_v49, 0 }
 0x546   :  { %960 = vmatpush.bf16.msra.mxu0 %v927_v61  ;;  %973 = vmatpush.bf16.msra.mxu1 %v928_v37 }
 0x547   :  { %1051 = vmatpush.bf16.msra.mxu2 %v1039_v0 }
 0x549   :  { %1108 = vmatmul.msk.bf16.vlgmr.msra.gmra.mxu0 %vm437_vm12, %v937_v50  ;;  %1109 = vmatmul.msk.bf16.vlgmr.msra.gmra.mxu1 %vm437_vm12, %v937_v50 }
 0x54a   :  { %1110 = vmatmul.msk.bf16.vlgmr.msra.gmra.mxu2 %vm529_vm7, %v1021_v40 }
 0x587   :  { %v1909_v32 = vpop.f32.mrf.mxu0  ;;  %v1911_v45 = vpop.f32.mrf.mxu1 }
 0x58f   :  { %v550_v59 = vpop.f32.mrf.mxu0  ;;  %v563_v34 = vpop.f32.mrf.mxu1 }
 0x5a7   :  { %v477_v39 = vpop.xlane.xlu2 %476 }
 0x5a8   :  { %v478_v2 = vmul.f32 %v477_v39, %v1455_v63 }
 0x5aa   :  { %v483_v17 = vpop.xlane.xlu0 %482  ;;  %v485_v18 = vmul.f32 %v478_v2, %v478_v2 }
 0x5ab   :  { %v484_v3 = vmul.f32 %v483_v17, %v1455_v63 }
 0x5ad   :  { %v486_v24 = vsub.f32 %v484_v3, %v485_v18 }
 0x5af   :  { %v487_v53 = vadd.f32 1e-05, %v486_v24 }
 0x5b1   :  { %1133 = vrsqrt.f32 %v487_v53  ;;  %vm494_vm1 = vweird.f32 %v487_v53 }
 0x5b7   :  { %v1134_v20 = vpop.eup %1133 }
 0x5b8   :  { %v489_v28 = vmul.f32 %v1134_v20, %v487_v53  ;;  %vm495_vm0 = vweird.f32 %v1134_v20 }
 0x5b9   :  { %vm496_vm2 = vmor %vm494_vm1, %vm495_vm0 }
 0x5ba   :  { %v490_v38 = vmul.f32 %v1134_v20, %v489_v28 }
 0x5bc   :  { %v491_v44 = vmul.f32 0.5, %v490_v38 }
 0x5be   :  { %v492_v14 = vsub.f32 1.5, %v491_v44 }
 0x5c0   :  { %v493_v7 = vmul.f32 %v1134_v20, %v492_v14 }
 0x5c2   :  { %v497_v8 = vsel %vm496_vm2, %v1134_v20, %v493_v7 }
 0x5c3   :  { %v498_v6 = vmul.f32 %v497_v8, %v473_v15 }
 0x5c4   :  { %v1066_v57 = vpop.f32.mrf.mxu3 }
 0x5c5   :  { %v506_v52 = vmul.f32 %v498_v6, %v478_v2 }
 0x5c6   :  { %v962_v30 = vpop.f32.mrf.mxu0  ;;  %v975_v55 = vpop.f32.mrf.mxu1 }
 0x5c7   :  { %v1922_v43 = vadd.f32 %v962_v30, %v942_v56  ;;  %v1924_v9 = vadd.f32 %v975_v55, %v942_v56  ;;  %v507_v47 = vsub.f32 %v474_v46, %v506_v52 }
 0x5c9   :  { %v981_v48 = vadd.f32 %v1924_v9, %v1922_v43  ;;  %v985_v12 = vmul.f32 %v1922_v43, %v1922_v43  ;;  %v986_v42 = vmul.f32 %v1924_v9, %v1924_v9 }
 0x5cb   :  { %982 = vadd.xlane.f32.xlu1 %v981_v48  ;;  %v987_v36 = vadd.f32 %v986_v42, %v985_v12 }
 0x5cc   :  { %v1068_v21 = vpop.f32.mrf.mxu3 }
 0x5cd   :  { %988 = vadd.xlane.f32.xlu2 %v987_v36  ;;  %v1053_v23 = vpop.f32.mrf.mxu2 }
 0x5ce   :  { %v964_v4 = vpop.f32.mrf.mxu0  ;;  %v977_v10 = vpop.f32.mrf.mxu1 }
 0x5d5   :  { %v1055_v58 = vpop.f32.mrf.mxu2 }
 0x5e4   :  { %501 = vperm.xlu1 %1124, %v498_v6  }
 0x5e5   :  { %510 = vperm.xlu2 %1125, %v507_v47  }
 0x5ec   :  { %526 = vperm.xlu1 %1124, %v523_v11  }
 0x5ed   :  { %1032 = vperm.xlu2 %1125, %v523_v11  }
 0x63e   :  { %v983_v16 = vpop.xlane.xlu1 %982 }
 0x63f   :  { %v984_v31 = vmul.f32 %v983_v16, %v1455_v63 }
 0x640   :  { %v989_v60 = vpop.xlane.xlu2 %988 }
 0x641   :  { %v991_v35 = vmul.f32 %v984_v31, %v984_v31  ;;  %v990_v26 = vmul.f32 %v989_v60, %v1455_v63 }
 0x643   :  { %v992_v27 = vsub.f32 %v990_v26, %v991_v35 }
 0x645   :  { %v993_v19 = vadd.f32 1e-05, %v992_v27 }
 0x647   :  { %1135 = vrsqrt.f32 %v993_v19  ;;  %vm1000_vm4 = vweird.f32 %v993_v19 }
 0x648   :  { %v511_v54 = vpop.permute.xlu2 %510 }
 0x64d   :  { %v1136_v13 = vpop.eup %1135 }
 0x64e   :  { %v995_v62 = vmul.f32 %v1136_v13, %v993_v19  ;;  %vm1001_vm3 = vweird.f32 %v1136_v13 }
 0x64f   :  { %vm1002_vm5 = vmor %vm1000_vm4, %vm1001_vm3 }
 0x650   :  { %v996_v29 = vmul.f32 %v1136_v13, %v995_v62 }
 0x652   :  { %v997_v51 = vmul.f32 0.5, %v996_v29 }
 0x654   :  { %v998_v1 = vsub.f32 1.5, %v997_v51 }
 0x656   :  { %v502_v61 = vpop.permute.xlu1 %501  ;;  %v999_v37 = vmul.f32 %v1136_v13, %v998_v1 }
 0x657   :  { %v504_v34 = vmul.f32 %v502_v61, %v1865_v5  ;;  %v505_v56 = vmul.f32 %v502_v61, %v1868_v41 }
 0x658   :  { %v1003_v50 = vsel %vm1002_vm5, %v1136_v13, %v999_v37 }
 0x659   :  { %v1004_v59 = vmul.f32 %v1003_v50, %v473_v15  ;;  %v513_v49 = vadd.f32 %v511_v54, %v504_v34  ;;  %v514_v22 = vadd.f32 %v511_v54, %v505_v56 }
 0x65b   :  { %1007 = vperm.xlu0 %1126, %v1004_v59   ;;  %v1012_v63 = vmul.f32 %v1004_v59, %v984_v31 }
 0x65d   :  { %v1013_v2 = vsub.f32 %v474_v46, %v1012_v63 }
 0x65e   :  { %v527_v25 = vpop.permute.xlu1 %526 }
 0x65f   :  { %v549_v39 = vadd.f32 %v1909_v32, %v527_v25  ;;  %v562_v0 = vadd.f32 %v1911_v45, %v527_v25  ;;  %v1033_v45 = vpop.permute.xlu2 %1032 }
 0x660   :  { %v1054_v20 = vadd.f32 %v1053_v23, %v1033_v45  ;;  %v1067_v28 = vadd.f32 %v1066_v57, %v1033_v45 }
 0x661   :  { %v565_v33 = vadd.f32 %v549_v39, %v513_v49  ;;  %v566_v40 = vadd.f32 %v562_v0, %v514_v22 }
 0x663   :  { %vm567_vm6 = vcmp.gt.f32.partialorder %v565_v33, 0.0  ;;  %vm568_vm8 = vcmp.gt.f32.partialorder %v566_v40, 0.0  ;;  %v569_v17 = vmul.f32 0.01, %v565_v33  ;;  %v570_v18 = vmul.f32 0.01, %v566_v40  ;;  %1016 = vperm.xlu0 %1126, %v1013_v2  }
 0x665   :  { %v571_v5 = vsel %vm567_vm6, %v565_v33, %v569_v17  ;;  %v572_v41 = vsel %vm568_vm8, %v566_v40, %v570_v18 }
 0x666   :  { %573 = vst [vmem:[%s1973_s12] sm:$0xff] %v571_v5 }
 0x667   :  { %574 = vst [vmem:[%s1973_s12 + $0x8] sm:$0xff] %v572_v41 }
 0x6cd   :  { %v1008_v32 = vpop.permute.xlu0 %1007 }
 0x6ce   :  { %v1010_v3 = vmul.f32 %v1008_v32, %v1922_v43  ;;  %v1011_v24 = vmul.f32 %v1008_v32, %v1924_v9 }
 0x6d5   :  { %v1017_v53 = vpop.permute.xlu0 %1016 }
 0x6d6   :  { %v1019_v30 = vadd.f32 %v1017_v53, %v1010_v3  ;;  %v1020_v55 = vadd.f32 %v1017_v53, %v1011_v24 }
 0x6d8   :  { %v1070_v38 = vadd.f32 %v1054_v20, %v1019_v30  ;;  %v1071_v48 = vadd.f32 %v1067_v28, %v1020_v55 }
 0x6da   :  { %vm1072_vm9 = vcmp.gt.f32.partialorder %v1070_v38, 0.0  ;;  %vm1073_vm12 = vcmp.gt.f32.partialorder %v1071_v48, 0.0  ;;  %v1074_v12 = vmul.f32 0.01, %v1070_v38  ;;  %v1075_v42 = vmul.f32 0.01, %v1071_v48 }
 0x6dc   :  { %v1076_v36 = vsel %vm1072_vm9, %v1070_v38, %v1074_v12  ;;  %v1077_v44 = vsel %vm1073_vm12, %v1071_v48, %v1075_v42 }
 0x6dd   :  { %1112 = vst [vmem:[%s1973_s12 + $0x10] sm:$0xff] %v1076_v36 }
 0x6de   :  { %1113 = vst [vmem:[%s1973_s12 + $0x18] sm:$0xff] %v1077_v44 }

</bundles_post_ra>
